<compile_context>
chip_gen: v5e
topology: v5e:2x2
jax: 0.10.0
libtpu: 0.0.40
codegen_flags: <defaults>
</compile_context>

<pallas_src>
import jax
import jax.numpy as jnp
from jax import lax
from jax.experimental import pallas as pl
from jax.experimental.pallas import tpu as pltpu


# ----------------------------------------------------------------------------
# Pallas kernel: fused bidirectional GRU recurrence + max-pool over time + FC.
#
#   gi_*  : (T, B, H)  pre-projected per-gate inputs (biases pre-folded),
#           gate order [r, z, n], directions f (forward) / b (backward).
#   whh   : (6, H, H)  recurrent weights W_hh_g^T, order [rf, zf, nf, rb, zb, nb]
#   bhn   : (2, 1, H)  b_hh_n per direction (must stay inside the r*(.) term)
#   fcw   : (2, H, 2)  fc weight^T split per direction
#   fcb   : (1, 2)     fc bias
#   out   : (B, 2)     logits
# ----------------------------------------------------------------------------
def gru_sentence_kernel(
    gi_rf_ref, gi_zf_ref, gi_nf_ref,
    gi_rb_ref, gi_zb_ref, gi_nb_ref,
    whh_ref, bhn_ref, fcw_ref, fcb_ref,
    out_ref,
):
    T, B, H = gi_rf_ref.shape

    # Hoist all weight / bias loads (and broadcasts) out of the recurrence.
    w_rf = whh_ref[0]
    w_zf = whh_ref[1]
    w_nf = whh_ref[2]
    w_rb = whh_ref[3]
    w_zb = whh_ref[4]
    w_nb = whh_ref[5]
    b_nf = jnp.broadcast_to(bhn_ref[0], (B, H))
    b_nb = jnp.broadcast_to(bhn_ref[1], (B, H))

    def step(gr, gz, gn, h, w_r, w_z, w_n, b_n):
        # PyTorch GRU cell, gate order [r, z, n]; b_ih (+ b_hh for r,z) already
        # folded into gr/gz/gn by the wrapper.
        r = jax.nn.sigmoid(gr + jnp.dot(h, w_r, preferred_element_type=jnp.float32))
        z = jax.nn.sigmoid(gz + jnp.dot(h, w_z, preferred_element_type=jnp.float32))
        n = jnp.tanh(gn + r * (jnp.dot(h, w_n, preferred_element_type=jnp.float32) + b_n))
        return (1.0 - z) * n + z * h

    h0 = jnp.zeros((B, H), jnp.float32)
    m0 = jnp.full((B, H), -jnp.inf, jnp.float32)

    # One fused loop: forward step t and backward step T-1-t interleave so the
    # two independent serial chains overlap (MXU push of one direction under the
    # EUP/VALU gate math of the other).  Running max == max_pool1d over time.
    def body(t, carry):
        h_f, h_b, m_f, m_b = carry
        tb = T - 1 - t
        h_f = step(gi_rf_ref[t], gi_zf_ref[t], gi_nf_ref[t],
                   h_f, w_rf, w_zf, w_nf, b_nf)
        h_b = step(gi_rb_ref[tb], gi_zb_ref[tb], gi_nb_ref[tb],
                   h_b, w_rb, w_zb, w_nb, b_nb)
        return h_f, h_b, jnp.maximum(m_f, h_f), jnp.maximum(m_b, h_b)

    _, _, max_f, max_b = lax.fori_loop(0, T, body, (h0, h0, m0, m0), unroll=True)

    # Final FC on pooled [fwd ; bwd] features without an in-kernel concat:
    #   out = max_f @ fc_w^T[:H] + max_b @ fc_w^T[H:] + fc_b
    out = (
        jnp.dot(max_f, fcw_ref[0], preferred_element_type=jnp.float32)
        + jnp.dot(max_b, fcw_ref[1], preferred_element_type=jnp.float32)
        + fcb_ref[...]
    )
    out_ref[...] = out.astype(out_ref.dtype)


# ----------------------------------------------------------------------------
# Wrapper: fold input projections into the embedding table (wrapper/XLA glue),
# gather time-major, then call the Pallas kernel for the recurrent hot path.
# ----------------------------------------------------------------------------
def gru_sentence_forward(x_ids, params):
    emb_table = params["embedding"].astype(jnp.float32)      # (vocab, V)
    H = params["w_hh_f"].shape[1]
    B, T = x_ids.shape

    ids_tm = x_ids.T                                          # (T, B) time-major

    def gate_tables(w_ih, b_ih, b_hh):
        # w_ih: (3H, V), b_ih/b_hh: (3H,), gate order [r, z, n].
        # Precompute (vocab, H) projected tables with b_ih folded, and b_hh
        # folded for r/z (b_hh_n must remain inside the r*(.) term).
        w_r, w_z, w_n = w_ih[:H], w_ih[H:2 * H], w_ih[2 * H:]
        t_r = emb_table @ w_r.T + b_ih[:H] + b_hh[:H]
        t_z = emb_table @ w_z.T + b_ih[H:2 * H] + b_hh[H:2 * H]
        t_n = emb_table @ w_n.T + b_ih[2 * H:]
        return t_r, t_z, t_n

    trf, tzf, tnf = gate_tables(params["w_ih_f"], params["b_ih_f"], params["b_hh_f"])
    trb, tzb, tnb = gate_tables(params["w_ih_b"], params["b_ih_b"], params["b_hh_b"])

    gather = lambda tbl: jnp.take(tbl, ids_tm, axis=0).astype(jnp.float32)  # (T, B, H)
    gi_rf, gi_zf, gi_nf = gather(trf), gather(tzf), gather(tnf)
    gi_rb, gi_zb, gi_nb = gather(trb), gather(tzb), gather(tnb)

    def split_whh(w_hh):  # (3H, H) -> three (H, H) transposed for `h @ W`
        return w_hh[:H].T, w_hh[H:2 * H].T, w_hh[2 * H:].T

    wrf, wzf, wnf = split_whh(params["w_hh_f"])
    wrb, wzb, wnb = split_whh(params["w_hh_b"])
    whh = jnp.stack([wrf, wzf, wnf, wrb, wzb, wnb], axis=0).astype(jnp.float32)  # (6,H,H)

    bhn = jnp.stack(
        [params["b_hh_f"][2 * H:].reshape(1, H),
         params["b_hh_b"][2 * H:].reshape(1, H)], axis=0).astype(jnp.float32)    # (2,1,H)

    fc_w = params["fc_w"]                                                        # (2, 2H)
    fcw = jnp.stack([fc_w[:, :H].T, fc_w[:, H:].T], axis=0).astype(jnp.float32)  # (2,H,2)
    fcb = params["fc_b"].reshape(1, 2).astype(jnp.float32)

    vmem = pl.BlockSpec(memory_space=pltpu.MemorySpace.VMEM)
    out = pl.pallas_call(
        gru_sentence_kernel,
        out_shape=jax.ShapeDtypeStruct((B, 2), jnp.float32),
        in_specs=[vmem] * 10,
        out_specs=vmem,
    )(gi_rf, gi_zf, gi_nf, gi_rb, gi_zb, gi_nb, whh, bhn, fcw, fcb)
    return out


# ----------------------------------------------------------------------------
# Pure-JAX reference (mirrors the PyTorch forward) for a correctness check.
# ----------------------------------------------------------------------------
def gru_sentence_reference(x_ids, params):
    emb = jnp.take(params["embedding"], x_ids, axis=0)    # (B, T, V)
    x = jnp.transpose(emb, (1, 0, 2))                     # (T, B, V)
    T, B, V = x.shape
    H = params["w_hh_f"].shape[1]

    def cell(x_t, h, w_ih, w_hh, b_ih, b_hh):
        gi = x_t @ w_ih.T + b_ih
        gh = h @ w_hh.T + b_hh
        r = jax.nn.sigmoid(gi[:, :H] + gh[:, :H])
        z = jax.nn.sigmoid(gi[:, H:2 * H] + gh[:, H:2 * H])
        n = jnp.tanh(gi[:, 2 * H:] + r * gh[:, 2 * H:])
        return (1.0 - z) * n + z * h

    h = jnp.zeros((B, H), jnp.float32)
    outs_f = []
    for t in range(T):
        h = cell(x[t], h, params["w_ih_f"], params["w_hh_f"],
                 params["b_ih_f"], params["b_hh_f"])
        outs_f.append(h)
    h = jnp.zeros((B, H), jnp.float32)
    outs_b = [None] * T
    for t in range(T - 1, -1, -1):
        h = cell(x[t], h, params["w_ih_b"], params["w_hh_b"],
                 params["b_ih_b"], params["b_hh_b"])
        outs_b[t] = h
    out_seq = jnp.concatenate(
        [jnp.stack(outs_f, 0), jnp.stack(outs_b, 0)], axis=-1)  # (T, B, 2H)
    pooled = jnp.max(out_seq, axis=0)                            # (B, 2H) max_pool1d
    # dropout(inplace) in eval mode is identity.
    return pooled @ params["fc_w"].T + params["fc_b"]


# ----------------------------------------------------------------------------
# Deterministic parameter construction + run.
# ----------------------------------------------------------------------------
def make_params(key, vocab, vec_len, hidden):
    ks = jax.random.split(key, 12)
    s = 1.0 / jnp.sqrt(hidden)
    u = lambda k, shape: jax.random.uniform(k, shape, jnp.float32, -s, s)
    return {
        "embedding": jax.random.normal(ks[0], (vocab, vec_len), jnp.float32) * 0.1,
        "w_ih_f": u(ks[1], (3 * hidden, vec_len)),
        "w_hh_f": u(ks[2], (3 * hidden, hidden)),
        "b_ih_f": u(ks[3], (3 * hidden,)),
        "b_hh_f": u(ks[4], (3 * hidden,)),
        "w_ih_b": u(ks[5], (3 * hidden, vec_len)),
        "w_hh_b": u(ks[6], (3 * hidden, hidden)),
        "b_ih_b": u(ks[7], (3 * hidden,)),
        "b_hh_b": u(ks[8], (3 * hidden,)),
        "fc_w": u(ks[9], (2, 2 * hidden)),
        "fc_b": u(ks[10], (2,)),
    }


if __name__ == "__main__":
    vocab, vec_len, hidden = 50, 32, 32
    batch, seq = 2, 8

    key = jax.random.PRNGKey(0)
    kp, kx = jax.random.split(key)
    params = make_params(kp, vocab, vec_len, hidden)
    x_ids = jax.random.randint(kx, (batch, seq), 0, vocab, dtype=jnp.int32)

    out = gru_sentence_forward(x_ids, params)
    out = jax.block_until_ready(out)

    ref = gru_sentence_reference(x_ids, params)
    assert out.shape == (batch, 2)
    assert jnp.allclose(out, ref, rtol=1e-4, atol=1e-4), (out, ref)

    print("KERNEL_OK")
</pallas_src>

<mosaic_0001>
module attributes {stable_mosaic.version = 11 : i64} {
  func.func @gru_sentence_kernel(%arg0: memref<8x2x32xf32, #tpu.memory_space<vmem>>, %arg1: memref<8x2x32xf32, #tpu.memory_space<vmem>>, %arg2: memref<8x2x32xf32, #tpu.memory_space<vmem>>, %arg3: memref<8x2x32xf32, #tpu.memory_space<vmem>>, %arg4: memref<8x2x32xf32, #tpu.memory_space<vmem>>, %arg5: memref<8x2x32xf32, #tpu.memory_space<vmem>>, %arg6: memref<6x32x32xf32, #tpu.memory_space<vmem>>, %arg7: memref<2x1x32xf32, #tpu.memory_space<vmem>>, %arg8: memref<2x32x2xf32, #tpu.memory_space<vmem>>, %arg9: memref<1x2xf32, #tpu.memory_space<vmem>>, %arg10: memref<2x2xf32, #tpu.memory_space<vmem>>) attributes {dimension_semantics = [], scalar_prefetch = 0 : i64, scratch_operands = 0 : i64, tpu.core_type = #tpu.core_type<tc>} {
    %c0 = arith.constant 0 : index
    %c0_0 = arith.constant 0 : index
    %c0_1 = arith.constant 0 : index
    %0 = vector.load %arg6[%c0, %c0_0, %c0_1] : memref<6x32x32xf32, #tpu.memory_space<vmem>>, vector<1x32x32xf32>
    %1 = vector.shape_cast %0 : vector<1x32x32xf32> to vector<32x32xf32>
    %c1 = arith.constant 1 : index
    %c0_2 = arith.constant 0 : index
    %c0_3 = arith.constant 0 : index
    %2 = vector.load %arg6[%c1, %c0_2, %c0_3] : memref<6x32x32xf32, #tpu.memory_space<vmem>>, vector<1x32x32xf32>
    %3 = vector.shape_cast %2 : vector<1x32x32xf32> to vector<32x32xf32>
    %c2 = arith.constant 2 : index
    %c0_4 = arith.constant 0 : index
    %c0_5 = arith.constant 0 : index
    %4 = vector.load %arg6[%c2, %c0_4, %c0_5] : memref<6x32x32xf32, #tpu.memory_space<vmem>>, vector<1x32x32xf32>
    %5 = vector.shape_cast %4 : vector<1x32x32xf32> to vector<32x32xf32>
    %c3 = arith.constant 3 : index
    %c0_6 = arith.constant 0 : index
    %c0_7 = arith.constant 0 : index
    %6 = vector.load %arg6[%c3, %c0_6, %c0_7] : memref<6x32x32xf32, #tpu.memory_space<vmem>>, vector<1x32x32xf32>
    %7 = vector.shape_cast %6 : vector<1x32x32xf32> to vector<32x32xf32>
    %c4 = arith.constant 4 : index
    %c0_8 = arith.constant 0 : index
    %c0_9 = arith.constant 0 : index
    %8 = vector.load %arg6[%c4, %c0_8, %c0_9] : memref<6x32x32xf32, #tpu.memory_space<vmem>>, vector<1x32x32xf32>
    %9 = vector.shape_cast %8 : vector<1x32x32xf32> to vector<32x32xf32>
    %c5 = arith.constant 5 : index
    %c0_10 = arith.constant 0 : index
    %c0_11 = arith.constant 0 : index
    %10 = vector.load %arg6[%c5, %c0_10, %c0_11] : memref<6x32x32xf32, #tpu.memory_space<vmem>>, vector<1x32x32xf32>
    %11 = vector.shape_cast %10 : vector<1x32x32xf32> to vector<32x32xf32>
    %c0_12 = arith.constant 0 : index
    %c0_13 = arith.constant 0 : index
    %c0_14 = arith.constant 0 : index
    %12 = vector.load %arg7[%c0_12, %c0_13, %c0_14] : memref<2x1x32xf32, #tpu.memory_space<vmem>>, vector<1x1x32xf32>
    %13 = vector.shape_cast %12 : vector<1x1x32xf32> to vector<1x32xf32>
    %14 = vector.shape_cast %13 : vector<1x32xf32> to vector<1x32xf32>
    %15 = vector.broadcast %14 : vector<1x32xf32> to vector<2x32xf32>
    %c1_15 = arith.constant 1 : index
    %c0_16 = arith.constant 0 : index
    %c0_17 = arith.constant 0 : index
    %16 = vector.load %arg7[%c1_15, %c0_16, %c0_17] : memref<2x1x32xf32, #tpu.memory_space<vmem>>, vector<1x1x32xf32>
    %17 = vector.shape_cast %16 : vector<1x1x32xf32> to vector<1x32xf32>
    %18 = vector.shape_cast %17 : vector<1x32xf32> to vector<1x32xf32>
    %19 = vector.broadcast %18 : vector<1x32xf32> to vector<2x32xf32>
    %cst = arith.constant 0.000000e+00 : f32
    %20 = vector.broadcast %cst : f32 to vector<2x32xf32>
    %cst_18 = arith.constant 0xFF800000 : f32
    %21 = vector.broadcast %cst_18 : f32 to vector<2x32xf32>
    %c0_i32 = arith.constant 0 : i32
    %c7_i32 = arith.constant 7 : i32
    %22 = arith.subi %c7_i32, %c0_i32 : i32
    %23 = arith.index_cast %c0_i32 : i32 to index
    %c0_19 = arith.constant 0 : index
    %c0_20 = arith.constant 0 : index
    %24 = vector.load %arg0[%23, %c0_19, %c0_20] : memref<8x2x32xf32, #tpu.memory_space<vmem>>, vector<1x2x32xf32>
    %25 = vector.shape_cast %24 : vector<1x2x32xf32> to vector<2x32xf32>
    %26 = arith.index_cast %c0_i32 : i32 to index
    %c0_21 = arith.constant 0 : index
    %c0_22 = arith.constant 0 : index
    %27 = vector.load %arg1[%26, %c0_21, %c0_22] : memref<8x2x32xf32, #tpu.memory_space<vmem>>, vector<1x2x32xf32>
    %28 = vector.shape_cast %27 : vector<1x2x32xf32> to vector<2x32xf32>
    %29 = arith.index_cast %c0_i32 : i32 to index
    %c0_23 = arith.constant 0 : index
    %c0_24 = arith.constant 0 : index
    %30 = vector.load %arg2[%29, %c0_23, %c0_24] : memref<8x2x32xf32, #tpu.memory_space<vmem>>, vector<1x2x32xf32>
    %31 = vector.shape_cast %30 : vector<1x2x32xf32> to vector<2x32xf32>
    %cst_25 = arith.constant dense<0.000000e+00> : vector<2x32xf32>
    %32 = tpu.matmul %20, %1, %cst_25 {dimension_numbers = #tpu.dot_dimension_numbers<[1], [0], [0], [1], [0, 0, 1, 1], [], []>} : vector<2x32xf32>, vector<32x32xf32>, vector<2x32xf32> -> vector<2x32xf32>
    %33 = arith.addf %25, %32 : vector<2x32xf32>
    %34 = arith.negf %33 : vector<2x32xf32>
    %35 = math.exp %34 : vector<2x32xf32>
    %cst_26 = arith.constant 1.000000e+00 : f32
    %36 = vector.broadcast %cst_26 : f32 to vector<2x32xf32>
    %37 = arith.addf %36, %35 : vector<2x32xf32>
    %38 = arith.divf %36, %37 : vector<2x32xf32>
    %cst_27 = arith.constant dense<0.000000e+00> : vector<2x32xf32>
    %39 = tpu.matmul %20, %3, %cst_27 {dimension_numbers = #tpu.dot_dimension_numbers<[1], [0], [0], [1], [0, 0, 1, 1], [], []>} : vector<2x32xf32>, vector<32x32xf32>, vector<2x32xf32> -> vector<2x32xf32>
    %40 = arith.addf %28, %39 : vector<2x32xf32>
    %41 = arith.negf %40 : vector<2x32xf32>
    %42 = math.exp %41 : vector<2x32xf32>
    %cst_28 = arith.constant 1.000000e+00 : f32
    %43 = vector.broadcast %cst_28 : f32 to vector<2x32xf32>
    %44 = arith.addf %43, %42 : vector<2x32xf32>
    %45 = arith.divf %43, %44 : vector<2x32xf32>
    %cst_29 = arith.constant dense<0.000000e+00> : vector<2x32xf32>
    %46 = tpu.matmul %20, %5, %cst_29 {dimension_numbers = #tpu.dot_dimension_numbers<[1], [0], [0], [1], [0, 0, 1, 1], [], []>} : vector<2x32xf32>, vector<32x32xf32>, vector<2x32xf32> -> vector<2x32xf32>
    %47 = arith.addf %46, %15 : vector<2x32xf32>
    %48 = arith.mulf %38, %47 : vector<2x32xf32>
    %49 = arith.addf %31, %48 : vector<2x32xf32>
    %50 = math.tanh %49 : vector<2x32xf32>
    %cst_30 = arith.constant 1.000000e+00 : f32
    %51 = vector.broadcast %cst_30 : f32 to vector<2x32xf32>
    %52 = arith.subf %51, %45 : vector<2x32xf32>
    %53 = arith.mulf %52, %50 : vector<2x32xf32>
    %54 = arith.mulf %45, %20 : vector<2x32xf32>
    %55 = arith.addf %53, %54 : vector<2x32xf32>
    %56 = arith.index_cast %22 : i32 to index
    %c0_31 = arith.constant 0 : index
    %c0_32 = arith.constant 0 : index
    %57 = vector.load %arg3[%56, %c0_31, %c0_32] : memref<8x2x32xf32, #tpu.memory_space<vmem>>, vector<1x2x32xf32>
    %58 = vector.shape_cast %57 : vector<1x2x32xf32> to vector<2x32xf32>
    %59 = arith.index_cast %22 : i32 to index
    %c0_33 = arith.constant 0 : index
    %c0_34 = arith.constant 0 : index
    %60 = vector.load %arg4[%59, %c0_33, %c0_34] : memref<8x2x32xf32, #tpu.memory_space<vmem>>, vector<1x2x32xf32>
    %61 = vector.shape_cast %60 : vector<1x2x32xf32> to vector<2x32xf32>
    %62 = arith.index_cast %22 : i32 to index
    %c0_35 = arith.constant 0 : index
    %c0_36 = arith.constant 0 : index
    %63 = vector.load %arg5[%62, %c0_35, %c0_36] : memref<8x2x32xf32, #tpu.memory_space<vmem>>, vector<1x2x32xf32>
    %64 = vector.shape_cast %63 : vector<1x2x32xf32> to vector<2x32xf32>
    %cst_37 = arith.constant dense<0.000000e+00> : vector<2x32xf32>
    %65 = tpu.matmul %20, %7, %cst_37 {dimension_numbers = #tpu.dot_dimension_numbers<[1], [0], [0], [1], [0, 0, 1, 1], [], []>} : vector<2x32xf32>, vector<32x32xf32>, vector<2x32xf32> -> vector<2x32xf32>
    %66 = arith.addf %58, %65 : vector<2x32xf32>
    %67 = arith.negf %66 : vector<2x32xf32>
    %68 = math.exp %67 : vector<2x32xf32>
    %cst_38 = arith.constant 1.000000e+00 : f32
    %69 = vector.broadcast %cst_38 : f32 to vector<2x32xf32>
    %70 = arith.addf %69, %68 : vector<2x32xf32>
    %71 = arith.divf %69, %70 : vector<2x32xf32>
    %cst_39 = arith.constant dense<0.000000e+00> : vector<2x32xf32>
    %72 = tpu.matmul %20, %9, %cst_39 {dimension_numbers = #tpu.dot_dimension_numbers<[1], [0], [0], [1], [0, 0, 1, 1], [], []>} : vector<2x32xf32>, vector<32x32xf32>, vector<2x32xf32> -> vector<2x32xf32>
    %73 = arith.addf %61, %72 : vector<2x32xf32>
    %74 = arith.negf %73 : vector<2x32xf32>
    %75 = math.exp %74 : vector<2x32xf32>
    %cst_40 = arith.constant 1.000000e+00 : f32
    %76 = vector.broadcast %cst_40 : f32 to vector<2x32xf32>
    %77 = arith.addf %76, %75 : vector<2x32xf32>
    %78 = arith.divf %76, %77 : vector<2x32xf32>
    %cst_41 = arith.constant dense<0.000000e+00> : vector<2x32xf32>
    %79 = tpu.matmul %20, %11, %cst_41 {dimension_numbers = #tpu.dot_dimension_numbers<[1], [0], [0], [1], [0, 0, 1, 1], [], []>} : vector<2x32xf32>, vector<32x32xf32>, vector<2x32xf32> -> vector<2x32xf32>
    %80 = arith.addf %79, %19 : vector<2x32xf32>
    %81 = arith.mulf %71, %80 : vector<2x32xf32>
    %82 = arith.addf %64, %81 : vector<2x32xf32>
    %83 = math.tanh %82 : vector<2x32xf32>
    %cst_42 = arith.constant 1.000000e+00 : f32
    %84 = vector.broadcast %cst_42 : f32 to vector<2x32xf32>
    %85 = arith.subf %84, %78 : vector<2x32xf32>
    %86 = arith.mulf %85, %83 : vector<2x32xf32>
    %87 = arith.mulf %78, %20 : vector<2x32xf32>
    %88 = arith.addf %86, %87 : vector<2x32xf32>
    %89 = arith.maximumf %21, %55 : vector<2x32xf32>
    %90 = arith.maximumf %21, %88 : vector<2x32xf32>
    %c1_i32 = arith.constant 1 : i32
    %c7_i32_43 = arith.constant 7 : i32
    %91 = arith.subi %c7_i32_43, %c1_i32 : i32
    %92 = arith.index_cast %c1_i32 : i32 to index
    %c0_44 = arith.constant 0 : index
    %c0_45 = arith.constant 0 : index
    %93 = vector.load %arg0[%92, %c0_44, %c0_45] : memref<8x2x32xf32, #tpu.memory_space<vmem>>, vector<1x2x32xf32>
    %94 = vector.shape_cast %93 : vector<1x2x32xf32> to vector<2x32xf32>
    %95 = arith.index_cast %c1_i32 : i32 to index
    %c0_46 = arith.constant 0 : index
    %c0_47 = arith.constant 0 : index
    %96 = vector.load %arg1[%95, %c0_46, %c0_47] : memref<8x2x32xf32, #tpu.memory_space<vmem>>, vector<1x2x32xf32>
    %97 = vector.shape_cast %96 : vector<1x2x32xf32> to vector<2x32xf32>
    %98 = arith.index_cast %c1_i32 : i32 to index
    %c0_48 = arith.constant 0 : index
    %c0_49 = arith.constant 0 : index
    %99 = vector.load %arg2[%98, %c0_48, %c0_49] : memref<8x2x32xf32, #tpu.memory_space<vmem>>, vector<1x2x32xf32>
    %100 = vector.shape_cast %99 : vector<1x2x32xf32> to vector<2x32xf32>
    %cst_50 = arith.constant dense<0.000000e+00> : vector<2x32xf32>
    %101 = tpu.matmul %55, %1, %cst_50 {dimension_numbers = #tpu.dot_dimension_numbers<[1], [0], [0], [1], [0, 0, 1, 1], [], []>} : vector<2x32xf32>, vector<32x32xf32>, vector<2x32xf32> -> vector<2x32xf32>
    %102 = arith.addf %94, %101 : vector<2x32xf32>
    %103 = arith.negf %102 : vector<2x32xf32>
    %104 = math.exp %103 : vector<2x32xf32>
    %cst_51 = arith.constant 1.000000e+00 : f32
    %105 = vector.broadcast %cst_51 : f32 to vector<2x32xf32>
    %106 = arith.addf %105, %104 : vector<2x32xf32>
    %107 = arith.divf %105, %106 : vector<2x32xf32>
    %cst_52 = arith.constant dense<0.000000e+00> : vector<2x32xf32>
    %108 = tpu.matmul %55, %3, %cst_52 {dimension_numbers = #tpu.dot_dimension_numbers<[1], [0], [0], [1], [0, 0, 1, 1], [], []>} : vector<2x32xf32>, vector<32x32xf32>, vector<2x32xf32> -> vector<2x32xf32>
    %109 = arith.addf %97, %108 : vector<2x32xf32>
    %110 = arith.negf %109 : vector<2x32xf32>
    %111 = math.exp %110 : vector<2x32xf32>
    %cst_53 = arith.constant 1.000000e+00 : f32
    %112 = vector.broadcast %cst_53 : f32 to vector<2x32xf32>
    %113 = arith.addf %112, %111 : vector<2x32xf32>
    %114 = arith.divf %112, %113 : vector<2x32xf32>
    %cst_54 = arith.constant dense<0.000000e+00> : vector<2x32xf32>
    %115 = tpu.matmul %55, %5, %cst_54 {dimension_numbers = #tpu.dot_dimension_numbers<[1], [0], [0], [1], [0, 0, 1, 1], [], []>} : vector<2x32xf32>, vector<32x32xf32>, vector<2x32xf32> -> vector<2x32xf32>
    %116 = arith.addf %115, %15 : vector<2x32xf32>
    %117 = arith.mulf %107, %116 : vector<2x32xf32>
    %118 = arith.addf %100, %117 : vector<2x32xf32>
    %119 = math.tanh %118 : vector<2x32xf32>
    %cst_55 = arith.constant 1.000000e+00 : f32
    %120 = vector.broadcast %cst_55 : f32 to vector<2x32xf32>
    %121 = arith.subf %120, %114 : vector<2x32xf32>
    %122 = arith.mulf %121, %119 : vector<2x32xf32>
    %123 = arith.mulf %114, %55 : vector<2x32xf32>
    %124 = arith.addf %122, %123 : vector<2x32xf32>
    %125 = arith.index_cast %91 : i32 to index
    %c0_56 = arith.constant 0 : index
    %c0_57 = arith.constant 0 : index
    %126 = vector.load %arg3[%125, %c0_56, %c0_57] : memref<8x2x32xf32, #tpu.memory_space<vmem>>, vector<1x2x32xf32>
    %127 = vector.shape_cast %126 : vector<1x2x32xf32> to vector<2x32xf32>
    %128 = arith.index_cast %91 : i32 to index
    %c0_58 = arith.constant 0 : index
    %c0_59 = arith.constant 0 : index
    %129 = vector.load %arg4[%128, %c0_58, %c0_59] : memref<8x2x32xf32, #tpu.memory_space<vmem>>, vector<1x2x32xf32>
    %130 = vector.shape_cast %129 : vector<1x2x32xf32> to vector<2x32xf32>
    %131 = arith.index_cast %91 : i32 to index
    %c0_60 = arith.constant 0 : index
    %c0_61 = arith.constant 0 : index
    %132 = vector.load %arg5[%131, %c0_60, %c0_61] : memref<8x2x32xf32, #tpu.memory_space<vmem>>, vector<1x2x32xf32>
    %133 = vector.shape_cast %132 : vector<1x2x32xf32> to vector<2x32xf32>
    %cst_62 = arith.constant dense<0.000000e+00> : vector<2x32xf32>
    %134 = tpu.matmul %88, %7, %cst_62 {dimension_numbers = #tpu.dot_dimension_numbers<[1], [0], [0], [1], [0, 0, 1, 1], [], []>} : vector<2x32xf32>, vector<32x32xf32>, vector<2x32xf32> -> vector<2x32xf32>
    %135 = arith.addf %127, %134 : vector<2x32xf32>
    %136 = arith.negf %135 : vector<2x32xf32>
    %137 = math.exp %136 : vector<2x32xf32>
    %cst_63 = arith.constant 1.000000e+00 : f32
    %138 = vector.broadcast %cst_63 : f32 to vector<2x32xf32>
    %139 = arith.addf %138, %137 : vector<2x32xf32>
    %140 = arith.divf %138, %139 : vector<2x32xf32>
    %cst_64 = arith.constant dense<0.000000e+00> : vector<2x32xf32>
    %141 = tpu.matmul %88, %9, %cst_64 {dimension_numbers = #tpu.dot_dimension_numbers<[1], [0], [0], [1], [0, 0, 1, 1], [], []>} : vector<2x32xf32>, vector<32x32xf32>, vector<2x32xf32> -> vector<2x32xf32>
    %142 = arith.addf %130, %141 : vector<2x32xf32>
    %143 = arith.negf %142 : vector<2x32xf32>
    %144 = math.exp %143 : vector<2x32xf32>
    %cst_65 = arith.constant 1.000000e+00 : f32
    %145 = vector.broadcast %cst_65 : f32 to vector<2x32xf32>
    %146 = arith.addf %145, %144 : vector<2x32xf32>
    %147 = arith.divf %145, %146 : vector<2x32xf32>
    %cst_66 = arith.constant dense<0.000000e+00> : vector<2x32xf32>
    %148 = tpu.matmul %88, %11, %cst_66 {dimension_numbers = #tpu.dot_dimension_numbers<[1], [0], [0], [1], [0, 0, 1, 1], [], []>} : vector<2x32xf32>, vector<32x32xf32>, vector<2x32xf32> -> vector<2x32xf32>
    %149 = arith.addf %148, %19 : vector<2x32xf32>
    %150 = arith.mulf %140, %149 : vector<2x32xf32>
    %151 = arith.addf %133, %150 : vector<2x32xf32>
    %152 = math.tanh %151 : vector<2x32xf32>
    %cst_67 = arith.constant 1.000000e+00 : f32
    %153 = vector.broadcast %cst_67 : f32 to vector<2x32xf32>
    %154 = arith.subf %153, %147 : vector<2x32xf32>
    %155 = arith.mulf %154, %152 : vector<2x32xf32>
    %156 = arith.mulf %147, %88 : vector<2x32xf32>
    %157 = arith.addf %155, %156 : vector<2x32xf32>
    %158 = arith.maximumf %89, %124 : vector<2x32xf32>
    %159 = arith.maximumf %90, %157 : vector<2x32xf32>
    %c2_i32 = arith.constant 2 : i32
    %c7_i32_68 = arith.constant 7 : i32
    %160 = arith.subi %c7_i32_68, %c2_i32 : i32
    %161 = arith.index_cast %c2_i32 : i32 to index
    %c0_69 = arith.constant 0 : index
    %c0_70 = arith.constant 0 : index
    %162 = vector.load %arg0[%161, %c0_69, %c0_70] : memref<8x2x32xf32, #tpu.memory_space<vmem>>, vector<1x2x32xf32>
    %163 = vector.shape_cast %162 : vector<1x2x32xf32> to vector<2x32xf32>
    %164 = arith.index_cast %c2_i32 : i32 to index
    %c0_71 = arith.constant 0 : index
    %c0_72 = arith.constant 0 : index
    %165 = vector.load %arg1[%164, %c0_71, %c0_72] : memref<8x2x32xf32, #tpu.memory_space<vmem>>, vector<1x2x32xf32>
    %166 = vector.shape_cast %165 : vector<1x2x32xf32> to vector<2x32xf32>
    %167 = arith.index_cast %c2_i32 : i32 to index
    %c0_73 = arith.constant 0 : index
    %c0_74 = arith.constant 0 : index
    %168 = vector.load %arg2[%167, %c0_73, %c0_74] : memref<8x2x32xf32, #tpu.memory_space<vmem>>, vector<1x2x32xf32>
    %169 = vector.shape_cast %168 : vector<1x2x32xf32> to vector<2x32xf32>
    %cst_75 = arith.constant dense<0.000000e+00> : vector<2x32xf32>
    %170 = tpu.matmul %124, %1, %cst_75 {dimension_numbers = #tpu.dot_dimension_numbers<[1], [0], [0], [1], [0, 0, 1, 1], [], []>} : vector<2x32xf32>, vector<32x32xf32>, vector<2x32xf32> -> vector<2x32xf32>
    %171 = arith.addf %163, %170 : vector<2x32xf32>
    %172 = arith.negf %171 : vector<2x32xf32>
    %173 = math.exp %172 : vector<2x32xf32>
    %cst_76 = arith.constant 1.000000e+00 : f32
    %174 = vector.broadcast %cst_76 : f32 to vector<2x32xf32>
    %175 = arith.addf %174, %173 : vector<2x32xf32>
    %176 = arith.divf %174, %175 : vector<2x32xf32>
    %cst_77 = arith.constant dense<0.000000e+00> : vector<2x32xf32>
    %177 = tpu.matmul %124, %3, %cst_77 {dimension_numbers = #tpu.dot_dimension_numbers<[1], [0], [0], [1], [0, 0, 1, 1], [], []>} : vector<2x32xf32>, vector<32x32xf32>, vector<2x32xf32> -> vector<2x32xf32>
    %178 = arith.addf %166, %177 : vector<2x32xf32>
    %179 = arith.negf %178 : vector<2x32xf32>
    %180 = math.exp %179 : vector<2x32xf32>
    %cst_78 = arith.constant 1.000000e+00 : f32
    %181 = vector.broadcast %cst_78 : f32 to vector<2x32xf32>
    %182 = arith.addf %181, %180 : vector<2x32xf32>
    %183 = arith.divf %181, %182 : vector<2x32xf32>
    %cst_79 = arith.constant dense<0.000000e+00> : vector<2x32xf32>
    %184 = tpu.matmul %124, %5, %cst_79 {dimension_numbers = #tpu.dot_dimension_numbers<[1], [0], [0], [1], [0, 0, 1, 1], [], []>} : vector<2x32xf32>, vector<32x32xf32>, vector<2x32xf32> -> vector<2x32xf32>
    %185 = arith.addf %184, %15 : vector<2x32xf32>
    %186 = arith.mulf %176, %185 : vector<2x32xf32>
    %187 = arith.addf %169, %186 : vector<2x32xf32>
    %188 = math.tanh %187 : vector<2x32xf32>
    %cst_80 = arith.constant 1.000000e+00 : f32
    %189 = vector.broadcast %cst_80 : f32 to vector<2x32xf32>
    %190 = arith.subf %189, %183 : vector<2x32xf32>
    %191 = arith.mulf %190, %188 : vector<2x32xf32>
    %192 = arith.mulf %183, %124 : vector<2x32xf32>
    %193 = arith.addf %191, %192 : vector<2x32xf32>
    %194 = arith.index_cast %160 : i32 to index
    %c0_81 = arith.constant 0 : index
    %c0_82 = arith.constant 0 : index
    %195 = vector.load %arg3[%194, %c0_81, %c0_82] : memref<8x2x32xf32, #tpu.memory_space<vmem>>, vector<1x2x32xf32>
    %196 = vector.shape_cast %195 : vector<1x2x32xf32> to vector<2x32xf32>
    %197 = arith.index_cast %160 : i32 to index
    %c0_83 = arith.constant 0 : index
    %c0_84 = arith.constant 0 : index
    %198 = vector.load %arg4[%197, %c0_83, %c0_84] : memref<8x2x32xf32, #tpu.memory_space<vmem>>, vector<1x2x32xf32>
    %199 = vector.shape_cast %198 : vector<1x2x32xf32> to vector<2x32xf32>
    %200 = arith.index_cast %160 : i32 to index
    %c0_85 = arith.constant 0 : index
    %c0_86 = arith.constant 0 : index
    %201 = vector.load %arg5[%200, %c0_85, %c0_86] : memref<8x2x32xf32, #tpu.memory_space<vmem>>, vector<1x2x32xf32>
    %202 = vector.shape_cast %201 : vector<1x2x32xf32> to vector<2x32xf32>
    %cst_87 = arith.constant dense<0.000000e+00> : vector<2x32xf32>
    %203 = tpu.matmul %157, %7, %cst_87 {dimension_numbers = #tpu.dot_dimension_numbers<[1], [0], [0], [1], [0, 0, 1, 1], [], []>} : vector<2x32xf32>, vector<32x32xf32>, vector<2x32xf32> -> vector<2x32xf32>
    %204 = arith.addf %196, %203 : vector<2x32xf32>
    %205 = arith.negf %204 : vector<2x32xf32>
    %206 = math.exp %205 : vector<2x32xf32>
    %cst_88 = arith.constant 1.000000e+00 : f32
    %207 = vector.broadcast %cst_88 : f32 to vector<2x32xf32>
    %208 = arith.addf %207, %206 : vector<2x32xf32>
    %209 = arith.divf %207, %208 : vector<2x32xf32>
    %cst_89 = arith.constant dense<0.000000e+00> : vector<2x32xf32>
    %210 = tpu.matmul %157, %9, %cst_89 {dimension_numbers = #tpu.dot_dimension_numbers<[1], [0], [0], [1], [0, 0, 1, 1], [], []>} : vector<2x32xf32>, vector<32x32xf32>, vector<2x32xf32> -> vector<2x32xf32>
    %211 = arith.addf %199, %210 : vector<2x32xf32>
    %212 = arith.negf %211 : vector<2x32xf32>
    %213 = math.exp %212 : vector<2x32xf32>
    %cst_90 = arith.constant 1.000000e+00 : f32
    %214 = vector.broadcast %cst_90 : f32 to vector<2x32xf32>
    %215 = arith.addf %214, %213 : vector<2x32xf32>
    %216 = arith.divf %214, %215 : vector<2x32xf32>
    %cst_91 = arith.constant dense<0.000000e+00> : vector<2x32xf32>
    %217 = tpu.matmul %157, %11, %cst_91 {dimension_numbers = #tpu.dot_dimension_numbers<[1], [0], [0], [1], [0, 0, 1, 1], [], []>} : vector<2x32xf32>, vector<32x32xf32>, vector<2x32xf32> -> vector<2x32xf32>
    %218 = arith.addf %217, %19 : vector<2x32xf32>
    %219 = arith.mulf %209, %218 : vector<2x32xf32>
    %220 = arith.addf %202, %219 : vector<2x32xf32>
    %221 = math.tanh %220 : vector<2x32xf32>
    %cst_92 = arith.constant 1.000000e+00 : f32
    %222 = vector.broadcast %cst_92 : f32 to vector<2x32xf32>
    %223 = arith.subf %222, %216 : vector<2x32xf32>
    %224 = arith.mulf %223, %221 : vector<2x32xf32>
    %225 = arith.mulf %216, %157 : vector<2x32xf32>
    %226 = arith.addf %224, %225 : vector<2x32xf32>
    %227 = arith.maximumf %158, %193 : vector<2x32xf32>
    %228 = arith.maximumf %159, %226 : vector<2x32xf32>
    %c3_i32 = arith.constant 3 : i32
    %c7_i32_93 = arith.constant 7 : i32
    %229 = arith.subi %c7_i32_93, %c3_i32 : i32
    %230 = arith.index_cast %c3_i32 : i32 to index
    %c0_94 = arith.constant 0 : index
    %c0_95 = arith.constant 0 : index
    %231 = vector.load %arg0[%230, %c0_94, %c0_95] : memref<8x2x32xf32, #tpu.memory_space<vmem>>, vector<1x2x32xf32>
    %232 = vector.shape_cast %231 : vector<1x2x32xf32> to vector<2x32xf32>
    %233 = arith.index_cast %c3_i32 : i32 to index
    %c0_96 = arith.constant 0 : index
    %c0_97 = arith.constant 0 : index
    %234 = vector.load %arg1[%233, %c0_96, %c0_97] : memref<8x2x32xf32, #tpu.memory_space<vmem>>, vector<1x2x32xf32>
    %235 = vector.shape_cast %234 : vector<1x2x32xf32> to vector<2x32xf32>
    %236 = arith.index_cast %c3_i32 : i32 to index
    %c0_98 = arith.constant 0 : index
    %c0_99 = arith.constant 0 : index
    %237 = vector.load %arg2[%236, %c0_98, %c0_99] : memref<8x2x32xf32, #tpu.memory_space<vmem>>, vector<1x2x32xf32>
    %238 = vector.shape_cast %237 : vector<1x2x32xf32> to vector<2x32xf32>
    %cst_100 = arith.constant dense<0.000000e+00> : vector<2x32xf32>
    %239 = tpu.matmul %193, %1, %cst_100 {dimension_numbers = #tpu.dot_dimension_numbers<[1], [0], [0], [1], [0, 0, 1, 1], [], []>} : vector<2x32xf32>, vector<32x32xf32>, vector<2x32xf32> -> vector<2x32xf32>
    %240 = arith.addf %232, %239 : vector<2x32xf32>
    %241 = arith.negf %240 : vector<2x32xf32>
    %242 = math.exp %241 : vector<2x32xf32>
    %cst_101 = arith.constant 1.000000e+00 : f32
    %243 = vector.broadcast %cst_101 : f32 to vector<2x32xf32>
    %244 = arith.addf %243, %242 : vector<2x32xf32>
    %245 = arith.divf %243, %244 : vector<2x32xf32>
    %cst_102 = arith.constant dense<0.000000e+00> : vector<2x32xf32>
    %246 = tpu.matmul %193, %3, %cst_102 {dimension_numbers = #tpu.dot_dimension_numbers<[1], [0], [0], [1], [0, 0, 1, 1], [], []>} : vector<2x32xf32>, vector<32x32xf32>, vector<2x32xf32> -> vector<2x32xf32>
    %247 = arith.addf %235, %246 : vector<2x32xf32>
    %248 = arith.negf %247 : vector<2x32xf32>
    %249 = math.exp %248 : vector<2x32xf32>
    %cst_103 = arith.constant 1.000000e+00 : f32
    %250 = vector.broadcast %cst_103 : f32 to vector<2x32xf32>
    %251 = arith.addf %250, %249 : vector<2x32xf32>
    %252 = arith.divf %250, %251 : vector<2x32xf32>
    %cst_104 = arith.constant dense<0.000000e+00> : vector<2x32xf32>
    %253 = tpu.matmul %193, %5, %cst_104 {dimension_numbers = #tpu.dot_dimension_numbers<[1], [0], [0], [1], [0, 0, 1, 1], [], []>} : vector<2x32xf32>, vector<32x32xf32>, vector<2x32xf32> -> vector<2x32xf32>
    %254 = arith.addf %253, %15 : vector<2x32xf32>
    %255 = arith.mulf %245, %254 : vector<2x32xf32>
    %256 = arith.addf %238, %255 : vector<2x32xf32>
    %257 = math.tanh %256 : vector<2x32xf32>
    %cst_105 = arith.constant 1.000000e+00 : f32
    %258 = vector.broadcast %cst_105 : f32 to vector<2x32xf32>
    %259 = arith.subf %258, %252 : vector<2x32xf32>
    %260 = arith.mulf %259, %257 : vector<2x32xf32>
    %261 = arith.mulf %252, %193 : vector<2x32xf32>
    %262 = arith.addf %260, %261 : vector<2x32xf32>
    %263 = arith.index_cast %229 : i32 to index
    %c0_106 = arith.constant 0 : index
    %c0_107 = arith.constant 0 : index
    %264 = vector.load %arg3[%263, %c0_106, %c0_107] : memref<8x2x32xf32, #tpu.memory_space<vmem>>, vector<1x2x32xf32>
    %265 = vector.shape_cast %264 : vector<1x2x32xf32> to vector<2x32xf32>
    %266 = arith.index_cast %229 : i32 to index
    %c0_108 = arith.constant 0 : index
    %c0_109 = arith.constant 0 : index
    %267 = vector.load %arg4[%266, %c0_108, %c0_109] : memref<8x2x32xf32, #tpu.memory_space<vmem>>, vector<1x2x32xf32>
    %268 = vector.shape_cast %267 : vector<1x2x32xf32> to vector<2x32xf32>
    %269 = arith.index_cast %229 : i32 to index
    %c0_110 = arith.constant 0 : index
    %c0_111 = arith.constant 0 : index
    %270 = vector.load %arg5[%269, %c0_110, %c0_111] : memref<8x2x32xf32, #tpu.memory_space<vmem>>, vector<1x2x32xf32>
    %271 = vector.shape_cast %270 : vector<1x2x32xf32> to vector<2x32xf32>
    %cst_112 = arith.constant dense<0.000000e+00> : vector<2x32xf32>
    %272 = tpu.matmul %226, %7, %cst_112 {dimension_numbers = #tpu.dot_dimension_numbers<[1], [0], [0], [1], [0, 0, 1, 1], [], []>} : vector<2x32xf32>, vector<32x32xf32>, vector<2x32xf32> -> vector<2x32xf32>
    %273 = arith.addf %265, %272 : vector<2x32xf32>
    %274 = arith.negf %273 : vector<2x32xf32>
    %275 = math.exp %274 : vector<2x32xf32>
    %cst_113 = arith.constant 1.000000e+00 : f32
    %276 = vector.broadcast %cst_113 : f32 to vector<2x32xf32>
    %277 = arith.addf %276, %275 : vector<2x32xf32>
    %278 = arith.divf %276, %277 : vector<2x32xf32>
    %cst_114 = arith.constant dense<0.000000e+00> : vector<2x32xf32>
    %279 = tpu.matmul %226, %9, %cst_114 {dimension_numbers = #tpu.dot_dimension_numbers<[1], [0], [0], [1], [0, 0, 1, 1], [], []>} : vector<2x32xf32>, vector<32x32xf32>, vector<2x32xf32> -> vector<2x32xf32>
    %280 = arith.addf %268, %279 : vector<2x32xf32>
    %281 = arith.negf %280 : vector<2x32xf32>
    %282 = math.exp %281 : vector<2x32xf32>
    %cst_115 = arith.constant 1.000000e+00 : f32
    %283 = vector.broadcast %cst_115 : f32 to vector<2x32xf32>
    %284 = arith.addf %283, %282 : vector<2x32xf32>
    %285 = arith.divf %283, %284 : vector<2x32xf32>
    %cst_116 = arith.constant dense<0.000000e+00> : vector<2x32xf32>
    %286 = tpu.matmul %226, %11, %cst_116 {dimension_numbers = #tpu.dot_dimension_numbers<[1], [0], [0], [1], [0, 0, 1, 1], [], []>} : vector<2x32xf32>, vector<32x32xf32>, vector<2x32xf32> -> vector<2x32xf32>
    %287 = arith.addf %286, %19 : vector<2x32xf32>
    %288 = arith.mulf %278, %287 : vector<2x32xf32>
    %289 = arith.addf %271, %288 : vector<2x32xf32>
    %290 = math.tanh %289 : vector<2x32xf32>
    %cst_117 = arith.constant 1.000000e+00 : f32
    %291 = vector.broadcast %cst_117 : f32 to vector<2x32xf32>
    %292 = arith.subf %291, %285 : vector<2x32xf32>
    %293 = arith.mulf %292, %290 : vector<2x32xf32>
    %294 = arith.mulf %285, %226 : vector<2x32xf32>
    %295 = arith.addf %293, %294 : vector<2x32xf32>
    %296 = arith.maximumf %227, %262 : vector<2x32xf32>
    %297 = arith.maximumf %228, %295 : vector<2x32xf32>
    %c4_i32 = arith.constant 4 : i32
    %c7_i32_118 = arith.constant 7 : i32
    %298 = arith.subi %c7_i32_118, %c4_i32 : i32
    %299 = arith.index_cast %c4_i32 : i32 to index
    %c0_119 = arith.constant 0 : index
    %c0_120 = arith.constant 0 : index
    %300 = vector.load %arg0[%299, %c0_119, %c0_120] : memref<8x2x32xf32, #tpu.memory_space<vmem>>, vector<1x2x32xf32>
    %301 = vector.shape_cast %300 : vector<1x2x32xf32> to vector<2x32xf32>
    %302 = arith.index_cast %c4_i32 : i32 to index
    %c0_121 = arith.constant 0 : index
    %c0_122 = arith.constant 0 : index
    %303 = vector.load %arg1[%302, %c0_121, %c0_122] : memref<8x2x32xf32, #tpu.memory_space<vmem>>, vector<1x2x32xf32>
    %304 = vector.shape_cast %303 : vector<1x2x32xf32> to vector<2x32xf32>
    %305 = arith.index_cast %c4_i32 : i32 to index
    %c0_123 = arith.constant 0 : index
    %c0_124 = arith.constant 0 : index
    %306 = vector.load %arg2[%305, %c0_123, %c0_124] : memref<8x2x32xf32, #tpu.memory_space<vmem>>, vector<1x2x32xf32>
    %307 = vector.shape_cast %306 : vector<1x2x32xf32> to vector<2x32xf32>
    %cst_125 = arith.constant dense<0.000000e+00> : vector<2x32xf32>
    %308 = tpu.matmul %262, %1, %cst_125 {dimension_numbers = #tpu.dot_dimension_numbers<[1], [0], [0], [1], [0, 0, 1, 1], [], []>} : vector<2x32xf32>, vector<32x32xf32>, vector<2x32xf32> -> vector<2x32xf32>
    %309 = arith.addf %301, %308 : vector<2x32xf32>
    %310 = arith.negf %309 : vector<2x32xf32>
    %311 = math.exp %310 : vector<2x32xf32>
    %cst_126 = arith.constant 1.000000e+00 : f32
    %312 = vector.broadcast %cst_126 : f32 to vector<2x32xf32>
    %313 = arith.addf %312, %311 : vector<2x32xf32>
    %314 = arith.divf %312, %313 : vector<2x32xf32>
    %cst_127 = arith.constant dense<0.000000e+00> : vector<2x32xf32>
    %315 = tpu.matmul %262, %3, %cst_127 {dimension_numbers = #tpu.dot_dimension_numbers<[1], [0], [0], [1], [0, 0, 1, 1], [], []>} : vector<2x32xf32>, vector<32x32xf32>, vector<2x32xf32> -> vector<2x32xf32>
    %316 = arith.addf %304, %315 : vector<2x32xf32>
    %317 = arith.negf %316 : vector<2x32xf32>
    %318 = math.exp %317 : vector<2x32xf32>
    %cst_128 = arith.constant 1.000000e+00 : f32
    %319 = vector.broadcast %cst_128 : f32 to vector<2x32xf32>
    %320 = arith.addf %319, %318 : vector<2x32xf32>
    %321 = arith.divf %319, %320 : vector<2x32xf32>
    %cst_129 = arith.constant dense<0.000000e+00> : vector<2x32xf32>
    %322 = tpu.matmul %262, %5, %cst_129 {dimension_numbers = #tpu.dot_dimension_numbers<[1], [0], [0], [1], [0, 0, 1, 1], [], []>} : vector<2x32xf32>, vector<32x32xf32>, vector<2x32xf32> -> vector<2x32xf32>
    %323 = arith.addf %322, %15 : vector<2x32xf32>
    %324 = arith.mulf %314, %323 : vector<2x32xf32>
    %325 = arith.addf %307, %324 : vector<2x32xf32>
    %326 = math.tanh %325 : vector<2x32xf32>
    %cst_130 = arith.constant 1.000000e+00 : f32
    %327 = vector.broadcast %cst_130 : f32 to vector<2x32xf32>
    %328 = arith.subf %327, %321 : vector<2x32xf32>
    %329 = arith.mulf %328, %326 : vector<2x32xf32>
    %330 = arith.mulf %321, %262 : vector<2x32xf32>
    %331 = arith.addf %329, %330 : vector<2x32xf32>
    %332 = arith.index_cast %298 : i32 to index
    %c0_131 = arith.constant 0 : index
    %c0_132 = arith.constant 0 : index
    %333 = vector.load %arg3[%332, %c0_131, %c0_132] : memref<8x2x32xf32, #tpu.memory_space<vmem>>, vector<1x2x32xf32>
    %334 = vector.shape_cast %333 : vector<1x2x32xf32> to vector<2x32xf32>
    %335 = arith.index_cast %298 : i32 to index
    %c0_133 = arith.constant 0 : index
    %c0_134 = arith.constant 0 : index
    %336 = vector.load %arg4[%335, %c0_133, %c0_134] : memref<8x2x32xf32, #tpu.memory_space<vmem>>, vector<1x2x32xf32>
    %337 = vector.shape_cast %336 : vector<1x2x32xf32> to vector<2x32xf32>
    %338 = arith.index_cast %298 : i32 to index
    %c0_135 = arith.constant 0 : index
    %c0_136 = arith.constant 0 : index
    %339 = vector.load %arg5[%338, %c0_135, %c0_136] : memref<8x2x32xf32, #tpu.memory_space<vmem>>, vector<1x2x32xf32>
    %340 = vector.shape_cast %339 : vector<1x2x32xf32> to vector<2x32xf32>
    %cst_137 = arith.constant dense<0.000000e+00> : vector<2x32xf32>
    %341 = tpu.matmul %295, %7, %cst_137 {dimension_numbers = #tpu.dot_dimension_numbers<[1], [0], [0], [1], [0, 0, 1, 1], [], []>} : vector<2x32xf32>, vector<32x32xf32>, vector<2x32xf32> -> vector<2x32xf32>
    %342 = arith.addf %334, %341 : vector<2x32xf32>
    %343 = arith.negf %342 : vector<2x32xf32>
    %344 = math.exp %343 : vector<2x32xf32>
    %cst_138 = arith.constant 1.000000e+00 : f32
    %345 = vector.broadcast %cst_138 : f32 to vector<2x32xf32>
    %346 = arith.addf %345, %344 : vector<2x32xf32>
    %347 = arith.divf %345, %346 : vector<2x32xf32>
    %cst_139 = arith.constant dense<0.000000e+00> : vector<2x32xf32>
    %348 = tpu.matmul %295, %9, %cst_139 {dimension_numbers = #tpu.dot_dimension_numbers<[1], [0], [0], [1], [0, 0, 1, 1], [], []>} : vector<2x32xf32>, vector<32x32xf32>, vector<2x32xf32> -> vector<2x32xf32>
    %349 = arith.addf %337, %348 : vector<2x32xf32>
    %350 = arith.negf %349 : vector<2x32xf32>
    %351 = math.exp %350 : vector<2x32xf32>
    %cst_140 = arith.constant 1.000000e+00 : f32
    %352 = vector.broadcast %cst_140 : f32 to vector<2x32xf32>
    %353 = arith.addf %352, %351 : vector<2x32xf32>
    %354 = arith.divf %352, %353 : vector<2x32xf32>
    %cst_141 = arith.constant dense<0.000000e+00> : vector<2x32xf32>
    %355 = tpu.matmul %295, %11, %cst_141 {dimension_numbers = #tpu.dot_dimension_numbers<[1], [0], [0], [1], [0, 0, 1, 1], [], []>} : vector<2x32xf32>, vector<32x32xf32>, vector<2x32xf32> -> vector<2x32xf32>
    %356 = arith.addf %355, %19 : vector<2x32xf32>
    %357 = arith.mulf %347, %356 : vector<2x32xf32>
    %358 = arith.addf %340, %357 : vector<2x32xf32>
    %359 = math.tanh %358 : vector<2x32xf32>
    %cst_142 = arith.constant 1.000000e+00 : f32
    %360 = vector.broadcast %cst_142 : f32 to vector<2x32xf32>
    %361 = arith.subf %360, %354 : vector<2x32xf32>
    %362 = arith.mulf %361, %359 : vector<2x32xf32>
    %363 = arith.mulf %354, %295 : vector<2x32xf32>
    %364 = arith.addf %362, %363 : vector<2x32xf32>
    %365 = arith.maximumf %296, %331 : vector<2x32xf32>
    %366 = arith.maximumf %297, %364 : vector<2x32xf32>
    %c5_i32 = arith.constant 5 : i32
    %c7_i32_143 = arith.constant 7 : i32
    %367 = arith.subi %c7_i32_143, %c5_i32 : i32
    %368 = arith.index_cast %c5_i32 : i32 to index
    %c0_144 = arith.constant 0 : index
    %c0_145 = arith.constant 0 : index
    %369 = vector.load %arg0[%368, %c0_144, %c0_145] : memref<8x2x32xf32, #tpu.memory_space<vmem>>, vector<1x2x32xf32>
    %370 = vector.shape_cast %369 : vector<1x2x32xf32> to vector<2x32xf32>
    %371 = arith.index_cast %c5_i32 : i32 to index
    %c0_146 = arith.constant 0 : index
    %c0_147 = arith.constant 0 : index
    %372 = vector.load %arg1[%371, %c0_146, %c0_147] : memref<8x2x32xf32, #tpu.memory_space<vmem>>, vector<1x2x32xf32>
    %373 = vector.shape_cast %372 : vector<1x2x32xf32> to vector<2x32xf32>
    %374 = arith.index_cast %c5_i32 : i32 to index
    %c0_148 = arith.constant 0 : index
    %c0_149 = arith.constant 0 : index
    %375 = vector.load %arg2[%374, %c0_148, %c0_149] : memref<8x2x32xf32, #tpu.memory_space<vmem>>, vector<1x2x32xf32>
    %376 = vector.shape_cast %375 : vector<1x2x32xf32> to vector<2x32xf32>
    %cst_150 = arith.constant dense<0.000000e+00> : vector<2x32xf32>
    %377 = tpu.matmul %331, %1, %cst_150 {dimension_numbers = #tpu.dot_dimension_numbers<[1], [0], [0], [1], [0, 0, 1, 1], [], []>} : vector<2x32xf32>, vector<32x32xf32>, vector<2x32xf32> -> vector<2x32xf32>
    %378 = arith.addf %370, %377 : vector<2x32xf32>
    %379 = arith.negf %378 : vector<2x32xf32>
    %380 = math.exp %379 : vector<2x32xf32>
    %cst_151 = arith.constant 1.000000e+00 : f32
    %381 = vector.broadcast %cst_151 : f32 to vector<2x32xf32>
    %382 = arith.addf %381, %380 : vector<2x32xf32>
    %383 = arith.divf %381, %382 : vector<2x32xf32>
    %cst_152 = arith.constant dense<0.000000e+00> : vector<2x32xf32>
    %384 = tpu.matmul %331, %3, %cst_152 {dimension_numbers = #tpu.dot_dimension_numbers<[1], [0], [0], [1], [0, 0, 1, 1], [], []>} : vector<2x32xf32>, vector<32x32xf32>, vector<2x32xf32> -> vector<2x32xf32>
    %385 = arith.addf %373, %384 : vector<2x32xf32>
    %386 = arith.negf %385 : vector<2x32xf32>
    %387 = math.exp %386 : vector<2x32xf32>
    %cst_153 = arith.constant 1.000000e+00 : f32
    %388 = vector.broadcast %cst_153 : f32 to vector<2x32xf32>
    %389 = arith.addf %388, %387 : vector<2x32xf32>
    %390 = arith.divf %388, %389 : vector<2x32xf32>
    %cst_154 = arith.constant dense<0.000000e+00> : vector<2x32xf32>
    %391 = tpu.matmul %331, %5, %cst_154 {dimension_numbers = #tpu.dot_dimension_numbers<[1], [0], [0], [1], [0, 0, 1, 1], [], []>} : vector<2x32xf32>, vector<32x32xf32>, vector<2x32xf32> -> vector<2x32xf32>
    %392 = arith.addf %391, %15 : vector<2x32xf32>
    %393 = arith.mulf %383, %392 : vector<2x32xf32>
    %394 = arith.addf %376, %393 : vector<2x32xf32>
    %395 = math.tanh %394 : vector<2x32xf32>
    %cst_155 = arith.constant 1.000000e+00 : f32
    %396 = vector.broadcast %cst_155 : f32 to vector<2x32xf32>
    %397 = arith.subf %396, %390 : vector<2x32xf32>
    %398 = arith.mulf %397, %395 : vector<2x32xf32>
    %399 = arith.mulf %390, %331 : vector<2x32xf32>
    %400 = arith.addf %398, %399 : vector<2x32xf32>
    %401 = arith.index_cast %367 : i32 to index
    %c0_156 = arith.constant 0 : index
    %c0_157 = arith.constant 0 : index
    %402 = vector.load %arg3[%401, %c0_156, %c0_157] : memref<8x2x32xf32, #tpu.memory_space<vmem>>, vector<1x2x32xf32>
    %403 = vector.shape_cast %402 : vector<1x2x32xf32> to vector<2x32xf32>
    %404 = arith.index_cast %367 : i32 to index
    %c0_158 = arith.constant 0 : index
    %c0_159 = arith.constant 0 : index
    %405 = vector.load %arg4[%404, %c0_158, %c0_159] : memref<8x2x32xf32, #tpu.memory_space<vmem>>, vector<1x2x32xf32>
    %406 = vector.shape_cast %405 : vector<1x2x32xf32> to vector<2x32xf32>
    %407 = arith.index_cast %367 : i32 to index
    %c0_160 = arith.constant 0 : index
    %c0_161 = arith.constant 0 : index
    %408 = vector.load %arg5[%407, %c0_160, %c0_161] : memref<8x2x32xf32, #tpu.memory_space<vmem>>, vector<1x2x32xf32>
    %409 = vector.shape_cast %408 : vector<1x2x32xf32> to vector<2x32xf32>
    %cst_162 = arith.constant dense<0.000000e+00> : vector<2x32xf32>
    %410 = tpu.matmul %364, %7, %cst_162 {dimension_numbers = #tpu.dot_dimension_numbers<[1], [0], [0], [1], [0, 0, 1, 1], [], []>} : vector<2x32xf32>, vector<32x32xf32>, vector<2x32xf32> -> vector<2x32xf32>
    %411 = arith.addf %403, %410 : vector<2x32xf32>
    %412 = arith.negf %411 : vector<2x32xf32>
    %413 = math.exp %412 : vector<2x32xf32>
    %cst_163 = arith.constant 1.000000e+00 : f32
    %414 = vector.broadcast %cst_163 : f32 to vector<2x32xf32>
    %415 = arith.addf %414, %413 : vector<2x32xf32>
    %416 = arith.divf %414, %415 : vector<2x32xf32>
    %cst_164 = arith.constant dense<0.000000e+00> : vector<2x32xf32>
    %417 = tpu.matmul %364, %9, %cst_164 {dimension_numbers = #tpu.dot_dimension_numbers<[1], [0], [0], [1], [0, 0, 1, 1], [], []>} : vector<2x32xf32>, vector<32x32xf32>, vector<2x32xf32> -> vector<2x32xf32>
    %418 = arith.addf %406, %417 : vector<2x32xf32>
    %419 = arith.negf %418 : vector<2x32xf32>
    %420 = math.exp %419 : vector<2x32xf32>
    %cst_165 = arith.constant 1.000000e+00 : f32
    %421 = vector.broadcast %cst_165 : f32 to vector<2x32xf32>
    %422 = arith.addf %421, %420 : vector<2x32xf32>
    %423 = arith.divf %421, %422 : vector<2x32xf32>
    %cst_166 = arith.constant dense<0.000000e+00> : vector<2x32xf32>
    %424 = tpu.matmul %364, %11, %cst_166 {dimension_numbers = #tpu.dot_dimension_numbers<[1], [0], [0], [1], [0, 0, 1, 1], [], []>} : vector<2x32xf32>, vector<32x32xf32>, vector<2x32xf32> -> vector<2x32xf32>
    %425 = arith.addf %424, %19 : vector<2x32xf32>
    %426 = arith.mulf %416, %425 : vector<2x32xf32>
    %427 = arith.addf %409, %426 : vector<2x32xf32>
    %428 = math.tanh %427 : vector<2x32xf32>
    %cst_167 = arith.constant 1.000000e+00 : f32
    %429 = vector.broadcast %cst_167 : f32 to vector<2x32xf32>
    %430 = arith.subf %429, %423 : vector<2x32xf32>
    %431 = arith.mulf %430, %428 : vector<2x32xf32>
    %432 = arith.mulf %423, %364 : vector<2x32xf32>
    %433 = arith.addf %431, %432 : vector<2x32xf32>
    %434 = arith.maximumf %365, %400 : vector<2x32xf32>
    %435 = arith.maximumf %366, %433 : vector<2x32xf32>
    %c6_i32 = arith.constant 6 : i32
    %c7_i32_168 = arith.constant 7 : i32
    %436 = arith.subi %c7_i32_168, %c6_i32 : i32
    %437 = arith.index_cast %c6_i32 : i32 to index
    %c0_169 = arith.constant 0 : index
    %c0_170 = arith.constant 0 : index
    %438 = vector.load %arg0[%437, %c0_169, %c0_170] : memref<8x2x32xf32, #tpu.memory_space<vmem>>, vector<1x2x32xf32>
    %439 = vector.shape_cast %438 : vector<1x2x32xf32> to vector<2x32xf32>
    %440 = arith.index_cast %c6_i32 : i32 to index
    %c0_171 = arith.constant 0 : index
    %c0_172 = arith.constant 0 : index
    %441 = vector.load %arg1[%440, %c0_171, %c0_172] : memref<8x2x32xf32, #tpu.memory_space<vmem>>, vector<1x2x32xf32>
    %442 = vector.shape_cast %441 : vector<1x2x32xf32> to vector<2x32xf32>
    %443 = arith.index_cast %c6_i32 : i32 to index
    %c0_173 = arith.constant 0 : index
    %c0_174 = arith.constant 0 : index
    %444 = vector.load %arg2[%443, %c0_173, %c0_174] : memref<8x2x32xf32, #tpu.memory_space<vmem>>, vector<1x2x32xf32>
    %445 = vector.shape_cast %444 : vector<1x2x32xf32> to vector<2x32xf32>
    %cst_175 = arith.constant dense<0.000000e+00> : vector<2x32xf32>
    %446 = tpu.matmul %400, %1, %cst_175 {dimension_numbers = #tpu.dot_dimension_numbers<[1], [0], [0], [1], [0, 0, 1, 1], [], []>} : vector<2x32xf32>, vector<32x32xf32>, vector<2x32xf32> -> vector<2x32xf32>
    %447 = arith.addf %439, %446 : vector<2x32xf32>
    %448 = arith.negf %447 : vector<2x32xf32>
    %449 = math.exp %448 : vector<2x32xf32>
    %cst_176 = arith.constant 1.000000e+00 : f32
    %450 = vector.broadcast %cst_176 : f32 to vector<2x32xf32>
    %451 = arith.addf %450, %449 : vector<2x32xf32>
    %452 = arith.divf %450, %451 : vector<2x32xf32>
    %cst_177 = arith.constant dense<0.000000e+00> : vector<2x32xf32>
    %453 = tpu.matmul %400, %3, %cst_177 {dimension_numbers = #tpu.dot_dimension_numbers<[1], [0], [0], [1], [0, 0, 1, 1], [], []>} : vector<2x32xf32>, vector<32x32xf32>, vector<2x32xf32> -> vector<2x32xf32>
    %454 = arith.addf %442, %453 : vector<2x32xf32>
    %455 = arith.negf %454 : vector<2x32xf32>
    %456 = math.exp %455 : vector<2x32xf32>
    %cst_178 = arith.constant 1.000000e+00 : f32
    %457 = vector.broadcast %cst_178 : f32 to vector<2x32xf32>
    %458 = arith.addf %457, %456 : vector<2x32xf32>
    %459 = arith.divf %457, %458 : vector<2x32xf32>
    %cst_179 = arith.constant dense<0.000000e+00> : vector<2x32xf32>
    %460 = tpu.matmul %400, %5, %cst_179 {dimension_numbers = #tpu.dot_dimension_numbers<[1], [0], [0], [1], [0, 0, 1, 1], [], []>} : vector<2x32xf32>, vector<32x32xf32>, vector<2x32xf32> -> vector<2x32xf32>
    %461 = arith.addf %460, %15 : vector<2x32xf32>
    %462 = arith.mulf %452, %461 : vector<2x32xf32>
    %463 = arith.addf %445, %462 : vector<2x32xf32>
    %464 = math.tanh %463 : vector<2x32xf32>
    %cst_180 = arith.constant 1.000000e+00 : f32
    %465 = vector.broadcast %cst_180 : f32 to vector<2x32xf32>
    %466 = arith.subf %465, %459 : vector<2x32xf32>
    %467 = arith.mulf %466, %464 : vector<2x32xf32>
    %468 = arith.mulf %459, %400 : vector<2x32xf32>
    %469 = arith.addf %467, %468 : vector<2x32xf32>
    %470 = arith.index_cast %436 : i32 to index
    %c0_181 = arith.constant 0 : index
    %c0_182 = arith.constant 0 : index
    %471 = vector.load %arg3[%470, %c0_181, %c0_182] : memref<8x2x32xf32, #tpu.memory_space<vmem>>, vector<1x2x32xf32>
    %472 = vector.shape_cast %471 : vector<1x2x32xf32> to vector<2x32xf32>
    %473 = arith.index_cast %436 : i32 to index
    %c0_183 = arith.constant 0 : index
    %c0_184 = arith.constant 0 : index
    %474 = vector.load %arg4[%473, %c0_183, %c0_184] : memref<8x2x32xf32, #tpu.memory_space<vmem>>, vector<1x2x32xf32>
    %475 = vector.shape_cast %474 : vector<1x2x32xf32> to vector<2x32xf32>
    %476 = arith.index_cast %436 : i32 to index
    %c0_185 = arith.constant 0 : index
    %c0_186 = arith.constant 0 : index
    %477 = vector.load %arg5[%476, %c0_185, %c0_186] : memref<8x2x32xf32, #tpu.memory_space<vmem>>, vector<1x2x32xf32>
    %478 = vector.shape_cast %477 : vector<1x2x32xf32> to vector<2x32xf32>
    %cst_187 = arith.constant dense<0.000000e+00> : vector<2x32xf32>
    %479 = tpu.matmul %433, %7, %cst_187 {dimension_numbers = #tpu.dot_dimension_numbers<[1], [0], [0], [1], [0, 0, 1, 1], [], []>} : vector<2x32xf32>, vector<32x32xf32>, vector<2x32xf32> -> vector<2x32xf32>
    %480 = arith.addf %472, %479 : vector<2x32xf32>
    %481 = arith.negf %480 : vector<2x32xf32>
    %482 = math.exp %481 : vector<2x32xf32>
    %cst_188 = arith.constant 1.000000e+00 : f32
    %483 = vector.broadcast %cst_188 : f32 to vector<2x32xf32>
    %484 = arith.addf %483, %482 : vector<2x32xf32>
    %485 = arith.divf %483, %484 : vector<2x32xf32>
    %cst_189 = arith.constant dense<0.000000e+00> : vector<2x32xf32>
    %486 = tpu.matmul %433, %9, %cst_189 {dimension_numbers = #tpu.dot_dimension_numbers<[1], [0], [0], [1], [0, 0, 1, 1], [], []>} : vector<2x32xf32>, vector<32x32xf32>, vector<2x32xf32> -> vector<2x32xf32>
    %487 = arith.addf %475, %486 : vector<2x32xf32>
    %488 = arith.negf %487 : vector<2x32xf32>
    %489 = math.exp %488 : vector<2x32xf32>
    %cst_190 = arith.constant 1.000000e+00 : f32
    %490 = vector.broadcast %cst_190 : f32 to vector<2x32xf32>
    %491 = arith.addf %490, %489 : vector<2x32xf32>
    %492 = arith.divf %490, %491 : vector<2x32xf32>
    %cst_191 = arith.constant dense<0.000000e+00> : vector<2x32xf32>
    %493 = tpu.matmul %433, %11, %cst_191 {dimension_numbers = #tpu.dot_dimension_numbers<[1], [0], [0], [1], [0, 0, 1, 1], [], []>} : vector<2x32xf32>, vector<32x32xf32>, vector<2x32xf32> -> vector<2x32xf32>
    %494 = arith.addf %493, %19 : vector<2x32xf32>
    %495 = arith.mulf %485, %494 : vector<2x32xf32>
    %496 = arith.addf %478, %495 : vector<2x32xf32>
    %497 = math.tanh %496 : vector<2x32xf32>
    %cst_192 = arith.constant 1.000000e+00 : f32
    %498 = vector.broadcast %cst_192 : f32 to vector<2x32xf32>
    %499 = arith.subf %498, %492 : vector<2x32xf32>
    %500 = arith.mulf %499, %497 : vector<2x32xf32>
    %501 = arith.mulf %492, %433 : vector<2x32xf32>
    %502 = arith.addf %500, %501 : vector<2x32xf32>
    %503 = arith.maximumf %434, %469 : vector<2x32xf32>
    %504 = arith.maximumf %435, %502 : vector<2x32xf32>
    %c7_i32_193 = arith.constant 7 : i32
    %c7_i32_194 = arith.constant 7 : i32
    %505 = arith.subi %c7_i32_194, %c7_i32_193 : i32
    %506 = arith.index_cast %c7_i32_193 : i32 to index
    %c0_195 = arith.constant 0 : index
    %c0_196 = arith.constant 0 : index
    %507 = vector.load %arg0[%506, %c0_195, %c0_196] : memref<8x2x32xf32, #tpu.memory_space<vmem>>, vector<1x2x32xf32>
    %508 = vector.shape_cast %507 : vector<1x2x32xf32> to vector<2x32xf32>
    %509 = arith.index_cast %c7_i32_193 : i32 to index
    %c0_197 = arith.constant 0 : index
    %c0_198 = arith.constant 0 : index
    %510 = vector.load %arg1[%509, %c0_197, %c0_198] : memref<8x2x32xf32, #tpu.memory_space<vmem>>, vector<1x2x32xf32>
    %511 = vector.shape_cast %510 : vector<1x2x32xf32> to vector<2x32xf32>
    %512 = arith.index_cast %c7_i32_193 : i32 to index
    %c0_199 = arith.constant 0 : index
    %c0_200 = arith.constant 0 : index
    %513 = vector.load %arg2[%512, %c0_199, %c0_200] : memref<8x2x32xf32, #tpu.memory_space<vmem>>, vector<1x2x32xf32>
    %514 = vector.shape_cast %513 : vector<1x2x32xf32> to vector<2x32xf32>
    %cst_201 = arith.constant dense<0.000000e+00> : vector<2x32xf32>
    %515 = tpu.matmul %469, %1, %cst_201 {dimension_numbers = #tpu.dot_dimension_numbers<[1], [0], [0], [1], [0, 0, 1, 1], [], []>} : vector<2x32xf32>, vector<32x32xf32>, vector<2x32xf32> -> vector<2x32xf32>
    %516 = arith.addf %508, %515 : vector<2x32xf32>
    %517 = arith.negf %516 : vector<2x32xf32>
    %518 = math.exp %517 : vector<2x32xf32>
    %cst_202 = arith.constant 1.000000e+00 : f32
    %519 = vector.broadcast %cst_202 : f32 to vector<2x32xf32>
    %520 = arith.addf %519, %518 : vector<2x32xf32>
    %521 = arith.divf %519, %520 : vector<2x32xf32>
    %cst_203 = arith.constant dense<0.000000e+00> : vector<2x32xf32>
    %522 = tpu.matmul %469, %3, %cst_203 {dimension_numbers = #tpu.dot_dimension_numbers<[1], [0], [0], [1], [0, 0, 1, 1], [], []>} : vector<2x32xf32>, vector<32x32xf32>, vector<2x32xf32> -> vector<2x32xf32>
    %523 = arith.addf %511, %522 : vector<2x32xf32>
    %524 = arith.negf %523 : vector<2x32xf32>
    %525 = math.exp %524 : vector<2x32xf32>
    %cst_204 = arith.constant 1.000000e+00 : f32
    %526 = vector.broadcast %cst_204 : f32 to vector<2x32xf32>
    %527 = arith.addf %526, %525 : vector<2x32xf32>
    %528 = arith.divf %526, %527 : vector<2x32xf32>
    %cst_205 = arith.constant dense<0.000000e+00> : vector<2x32xf32>
    %529 = tpu.matmul %469, %5, %cst_205 {dimension_numbers = #tpu.dot_dimension_numbers<[1], [0], [0], [1], [0, 0, 1, 1], [], []>} : vector<2x32xf32>, vector<32x32xf32>, vector<2x32xf32> -> vector<2x32xf32>
    %530 = arith.addf %529, %15 : vector<2x32xf32>
    %531 = arith.mulf %521, %530 : vector<2x32xf32>
    %532 = arith.addf %514, %531 : vector<2x32xf32>
    %533 = math.tanh %532 : vector<2x32xf32>
    %cst_206 = arith.constant 1.000000e+00 : f32
    %534 = vector.broadcast %cst_206 : f32 to vector<2x32xf32>
    %535 = arith.subf %534, %528 : vector<2x32xf32>
    %536 = arith.mulf %535, %533 : vector<2x32xf32>
    %537 = arith.mulf %528, %469 : vector<2x32xf32>
    %538 = arith.addf %536, %537 : vector<2x32xf32>
    %539 = arith.index_cast %505 : i32 to index
    %c0_207 = arith.constant 0 : index
    %c0_208 = arith.constant 0 : index
    %540 = vector.load %arg3[%539, %c0_207, %c0_208] : memref<8x2x32xf32, #tpu.memory_space<vmem>>, vector<1x2x32xf32>
    %541 = vector.shape_cast %540 : vector<1x2x32xf32> to vector<2x32xf32>
    %542 = arith.index_cast %505 : i32 to index
    %c0_209 = arith.constant 0 : index
    %c0_210 = arith.constant 0 : index
    %543 = vector.load %arg4[%542, %c0_209, %c0_210] : memref<8x2x32xf32, #tpu.memory_space<vmem>>, vector<1x2x32xf32>
    %544 = vector.shape_cast %543 : vector<1x2x32xf32> to vector<2x32xf32>
    %545 = arith.index_cast %505 : i32 to index
    %c0_211 = arith.constant 0 : index
    %c0_212 = arith.constant 0 : index
    %546 = vector.load %arg5[%545, %c0_211, %c0_212] : memref<8x2x32xf32, #tpu.memory_space<vmem>>, vector<1x2x32xf32>
    %547 = vector.shape_cast %546 : vector<1x2x32xf32> to vector<2x32xf32>
    %cst_213 = arith.constant dense<0.000000e+00> : vector<2x32xf32>
    %548 = tpu.matmul %502, %7, %cst_213 {dimension_numbers = #tpu.dot_dimension_numbers<[1], [0], [0], [1], [0, 0, 1, 1], [], []>} : vector<2x32xf32>, vector<32x32xf32>, vector<2x32xf32> -> vector<2x32xf32>
    %549 = arith.addf %541, %548 : vector<2x32xf32>
    %550 = arith.negf %549 : vector<2x32xf32>
    %551 = math.exp %550 : vector<2x32xf32>
    %cst_214 = arith.constant 1.000000e+00 : f32
    %552 = vector.broadcast %cst_214 : f32 to vector<2x32xf32>
    %553 = arith.addf %552, %551 : vector<2x32xf32>
    %554 = arith.divf %552, %553 : vector<2x32xf32>
    %cst_215 = arith.constant dense<0.000000e+00> : vector<2x32xf32>
    %555 = tpu.matmul %502, %9, %cst_215 {dimension_numbers = #tpu.dot_dimension_numbers<[1], [0], [0], [1], [0, 0, 1, 1], [], []>} : vector<2x32xf32>, vector<32x32xf32>, vector<2x32xf32> -> vector<2x32xf32>
    %556 = arith.addf %544, %555 : vector<2x32xf32>
    %557 = arith.negf %556 : vector<2x32xf32>
    %558 = math.exp %557 : vector<2x32xf32>
    %cst_216 = arith.constant 1.000000e+00 : f32
    %559 = vector.broadcast %cst_216 : f32 to vector<2x32xf32>
    %560 = arith.addf %559, %558 : vector<2x32xf32>
    %561 = arith.divf %559, %560 : vector<2x32xf32>
    %cst_217 = arith.constant dense<0.000000e+00> : vector<2x32xf32>
    %562 = tpu.matmul %502, %11, %cst_217 {dimension_numbers = #tpu.dot_dimension_numbers<[1], [0], [0], [1], [0, 0, 1, 1], [], []>} : vector<2x32xf32>, vector<32x32xf32>, vector<2x32xf32> -> vector<2x32xf32>
    %563 = arith.addf %562, %19 : vector<2x32xf32>
    %564 = arith.mulf %554, %563 : vector<2x32xf32>
    %565 = arith.addf %547, %564 : vector<2x32xf32>
    %566 = math.tanh %565 : vector<2x32xf32>
    %cst_218 = arith.constant 1.000000e+00 : f32
    %567 = vector.broadcast %cst_218 : f32 to vector<2x32xf32>
    %568 = arith.subf %567, %561 : vector<2x32xf32>
    %569 = arith.mulf %568, %566 : vector<2x32xf32>
    %570 = arith.mulf %561, %502 : vector<2x32xf32>
    %571 = arith.addf %569, %570 : vector<2x32xf32>
    %572 = arith.maximumf %503, %538 : vector<2x32xf32>
    %573 = arith.maximumf %504, %571 : vector<2x32xf32>
    %c8_i32 = arith.constant 8 : i32
    %c0_219 = arith.constant 0 : index
    %c0_220 = arith.constant 0 : index
    %c0_221 = arith.constant 0 : index
    %574 = vector.load %arg8[%c0_219, %c0_220, %c0_221] : memref<2x32x2xf32, #tpu.memory_space<vmem>>, vector<1x32x2xf32>
    %575 = vector.shape_cast %574 : vector<1x32x2xf32> to vector<32x2xf32>
    %cst_222 = arith.constant dense<0.000000e+00> : vector<2x2xf32>
    %576 = tpu.matmul %572, %575, %cst_222 {dimension_numbers = #tpu.dot_dimension_numbers<[1], [0], [0], [1], [0, 0, 1, 1], [], []>} : vector<2x32xf32>, vector<32x2xf32>, vector<2x2xf32> -> vector<2x2xf32>
    %c1_223 = arith.constant 1 : index
    %c0_224 = arith.constant 0 : index
    %c0_225 = arith.constant 0 : index
    %577 = vector.load %arg8[%c1_223, %c0_224, %c0_225] : memref<2x32x2xf32, #tpu.memory_space<vmem>>, vector<1x32x2xf32>
    %578 = vector.shape_cast %577 : vector<1x32x2xf32> to vector<32x2xf32>
    %cst_226 = arith.constant dense<0.000000e+00> : vector<2x2xf32>
    %579 = tpu.matmul %573, %578, %cst_226 {dimension_numbers = #tpu.dot_dimension_numbers<[1], [0], [0], [1], [0, 0, 1, 1], [], []>} : vector<2x32xf32>, vector<32x2xf32>, vector<2x2xf32> -> vector<2x2xf32>
    %580 = arith.addf %576, %579 : vector<2x2xf32>
    %c0_227 = arith.constant 0 : index
    %c0_228 = arith.constant 0 : index
    %581 = vector.load %arg9[%c0_227, %c0_228] : memref<1x2xf32, #tpu.memory_space<vmem>>, vector<1x2xf32>
    %582 = vector.broadcast %581 : vector<1x2xf32> to vector<2x2xf32>
    %583 = arith.addf %580, %582 : vector<2x2xf32>
    %c0_229 = arith.constant 0 : index
    %c0_230 = arith.constant 0 : index
    %584 = vector.load %arg10[%c0_229, %c0_230] : memref<2x2xf32, #tpu.memory_space<vmem>>, vector<2x2xf32>
    tpu.vector_store %arg10[%c0_229, %c0_230], %583 {strides = array<i32>} : memref<2x2xf32, #tpu.memory_space<vmem>>, vector<2x2xf32>,
    return
  }
}

</mosaic_0001>

<bundles_post_ra>
// kernel: tpu_custom_call.1
= control target key start
LH: loop header
LB: loop body
LE: loop exit
PB: predicated region body
PF: predicated region fallthrough
CT: control target
= control target key end

     0   :  { %15 = vsyncpa [#allocation3], 0  ;;  %s3247_s0 = inlined_call_operand.vmem [shape: f32[8,2,32], index: 0, kind: input, shape index: {}]   ;;  %s3248_s1 = inlined_call_operand.vmem [shape: f32[8,2,32], index: 1, kind: input, shape index: {}]   ;;  %s3249_s2 = inlined_call_operand.vmem [shape: f32[8,2,32], index: 2, kind: input, shape index: {}]   ;;  %s3250_s3 = inlined_call_operand.vmem [shape: f32[8,2,32], index: 3, kind: input, shape index: {}]   ;;  %s3251_s4 = inlined_call_operand.hbm [shape: f32[8,2,32], index: 4, kind: input, shape index: {}]   ;;  %s3252_s5 = inlined_call_operand.hbm [shape: f32[8,2,32], index: 5, kind: input, shape index: {}]   ;;  %s3253_s6 = inlined_call_operand.hbm [shape: f32[6,32,32], index: 6, kind: input, shape index: {}]   ;;  %s3254_s7 = inlined_call_operand.vmem [shape: f32[2,1,32], index: 7, kind: input, shape index: {}]   ;;  %s3255_s8 = inlined_call_operand.vmem [shape: f32[2,32,2], index: 8, kind: input, shape index: {}]   ;;  %s3256_s9 = inlined_call_operand.vmem [shape: f32[1,2], index: 9, kind: input, shape index: {}]   ;;  %s3257_s10 = inlined_call_operand.hbm [shape: f32[2,2], index: 10, kind: output, shape index: {}]  }
   0x1   :  { %16 = vsyncpa [#allocation6], 0 }
   0x2   :  { %17 = vsyncpa [#allocation4], 0  ;;  %s43_s15 = sshll.u32 %s3252_s5, 4  ;;  %s2472_s16 = smov [#allocation5]   ;;  %s44_s15 = int_to_ptr.hbm [resolvable:$true] %s43_s15 }
   0x3   :  { %s45_s17 = sshll.u32 %s2472_s16, 4  ;;  %s30_s20 = sshll.u32 %s3251_s4, 4  ;;  %s46_s17 = int_to_ptr.vmem [resolvable:$true] %s45_s17  ;;  %s31_s20 = int_to_ptr.hbm [resolvable:$true] %s30_s20 }
   0x4   :  { %s2473_s21 = smov 32   ;;  %s2474_s22 = smov 2  }
   0x5   :  { %51 = dma.hbm_to_vmem [thread:$0]  %s44_s15, 256, %s46_s17, [#allocation6], %s2473_s21, %s2473_s21, %s2474_s22  }
   0x6   :  { %s2475_s23 = smov [#allocation2]   ;;  %s56_s27 = sshll.u32 %s3253_s6, 4  ;;  %s57_s27 = int_to_ptr.hbm [resolvable:$true] %s56_s27 }
   0x7   :  { %s32_s24 = sshll.u32 %s2475_s23, 4  ;;  %s2476_s5 = smov [#allocation7]   ;;  %s33_s24 = int_to_ptr.vmem [resolvable:$true] %s32_s24 }
   0x8   :  { %38 = dma.hbm_to_vmem [thread:$0]  %s31_s20, 256, %s33_s24, [#allocation3], %s2473_s21, %s2473_s21, %s2474_s22  }
   0x9   :  { %s58_s28 = sshll.u32 %s2476_s5, 4  ;;  %s2477_s29 = smov 128   ;;  %s59_s28 = int_to_ptr.vmem [resolvable:$true] %s58_s28 }
   0xa   :  { %s2478_s30 = smov 8  }
   0xb   :  { %64 = dma.hbm_to_vmem [thread:$0]  %s57_s27, 3072, %s59_s28, [#allocation6], %s2477_s29, %s2477_s29, %s2478_s30  }
   0xc   :  { %2466 = dma.done.wait [#allocation3], 256  }
   0xd   :  { %2467 = vsyncadd [#allocation3], 4294967040 }
   0xe   :  { %2468 = dma.done.wait [#allocation6], 3328  }
   0xf   :  { %2469 = vsyncadd [#allocation6], 4294963968  ;;  %v2545_v0 = vld [vmem:[#allocation7 + $0x18] sm:$0xff]  ;;  %v2553_v3 = vld [vmem:[#allocation7 + $0x10] sm:$0xff]  ;;  %v2479_v15 = vmov 0.0   ;;  %s2480_s23 = smov [#allocation8]  }
  0x10   :  { %v2547_v1 = vld [vmem:[#allocation7 + $0x38] sm:$0xff]  ;;  %140 = vmatpush.msra.mxu0 %v2545_v0  ;;  %v2555_v4 = vld [vmem:[#allocation7 + $0x30] sm:$0xff]  ;;  %v2560_v6 = vld [vmem:[#allocation7 + $0x8] sm:$0xff]  ;;  %s2050_s24 = sshll.u32 %s2480_s23, 4  ;;  %s2052_s27 = sshll.u32 %s3257_s10, 4  ;;  %s2051_s24 = int_to_ptr.vmem [resolvable:$true] %s2050_s24  ;;  %s2053_s27 = int_to_ptr.hbm [resolvable:$true] %s2052_s27 }
  0x11   :  { %v2549_v2 = vld [vmem:[#allocation7 + $0x78] sm:$0xff]  ;;  %180 = vmatpush.msra.mxu1 %v2547_v1  ;;  %v2557_v5 = vld [vmem:[#allocation7 + $0x70] sm:$0xff]  ;;  %v2562_v7 = vld [vmem:[#allocation7 + $0x28] sm:$0xff] }
  0x12   :  { %253 = vmatpush.msra.mxu3 %v2549_v2  ;;  %141 = vmatpush.msra.mxu0 %v2553_v3  ;;  %v2566_v8 = vld [vmem:[#allocation7 + $0x68] sm:$0xff]  ;;  %v2569_v9 = vld [vmem:[#allocation7] sm:$0xff]  ;;  %v2577_v12 = vld [vmem:[#allocation7 + $0x58] sm:$0xff] }
  0x13   :  { %181 = vmatpush.msra.mxu1 %v2555_v4  ;;  %v2571_v10 = vld [vmem:[#allocation7 + $0x20] sm:$0xff]  ;;  %220 = vmatpush.msra.mxu2 %v2577_v12  ;;  %v2583_v13 = vld [vmem:[#allocation7 + $0x98] sm:$0xff]  ;;  %v2585_v14 = vld [vmem:[#allocation7 + $0x50] sm:$0xff] }
  0x14   :  { %254 = vmatpush.msra.mxu3 %v2557_v5  ;;  %142 = vmatpush.msra.mxu0 %v2560_v6  ;;  %v2575_v11 = vld [vmem:[#allocation7 + $0x60] sm:$0xff]  ;;  %v2588_v16 = vld [vmem:[#allocation7 + $0xb8] sm:$0xff]  ;;  %v2590_v17 = vld [vmem:[#allocation7 + $0x90] sm:$0xff] }
  0x15   :  { %182 = vmatpush.msra.mxu1 %v2562_v7  ;;  %v2592_v18 = vld [vmem:[#allocation7 + $0x48] sm:$0xff]  ;;  %221 = vmatpush.msra.mxu2 %v2585_v14  ;;  %v2596_v19 = vld [vmem:[#allocation7 + $0xb0] sm:$0xff]  ;;  %v2600_v21 = vld [vmem:[#allocation7 + $0x40] sm:$0xff] }
  0x16   :  { %255 = vmatpush.msra.mxu3 %v2566_v8  ;;  %143 = vmatpush.msra.mxu0 %v2569_v9  ;;  %v2598_v20 = vld [vmem:[#allocation7 + $0x88] sm:$0xff]  ;;  %v2608_v23 = vld [vmem:[#allocation7 + $0x80] sm:$0xff] }
  0x17   :  { %183 = vmatpush.msra.mxu1 %v2571_v10  ;;  %144 = vmatmul.f32.vlgmr.msra.gmra.mxu0 %v2479_v15  ;;  %v2606_v22 = vld [vmem:[#allocation7 + $0xa8] sm:$0xff]  ;;  %v2614_v24 = vld [vmem:[#allocation7 + $0xa0] sm:$0xff] }
  0x18   :  { %256 = vmatpush.msra.mxu3 %v2575_v11  ;;  %184 = vmatmul.f32.vlgmr.msra.gmra.mxu1 %v2479_v15  ;;  %v121_v25 = vld [vmem:[%s3247_s0] sm:$0x3]  ;;  %v2066_v33 = vld [vmem:[%s3250_s3 + $0xe] sm:$0x3] }
  0x19   :  { %257 = vmatmul.f32.vlgmr.msra.gmra.mxu3 %v2479_v15  ;;  %293 = vmatpush.msrb.mxu0 %v2583_v13  ;;  %v122_v26 = vld [vmem:[%s3248_s1] sm:$0x3]  ;;  %v238_v35 = vld [vmem:[#allocation2 + $0xe] sm:$0x3] }
  0x1a   :  { %333 = vmatpush.msrb.mxu1 %v2588_v16  ;;  %409 = vmatpush.msrb.mxu3 %v2547_v1  ;;  %v2663_v55 = vld [vmem:[%s3254_s7] ss:$0 sm:$0xff] }
  0x1b   :  { %294 = vmatpush.msrb.mxu0 %v2590_v17  ;;  %222 = vmatpush.msra.mxu2 %v2592_v18 }
  0x1c   :  { %334 = vmatpush.msrb.mxu1 %v2596_v19  ;;  %410 = vmatpush.msrb.mxu3 %v2555_v4 }
  0x1d   :  { %295 = vmatpush.msrb.mxu0 %v2598_v20  ;;  %223 = vmatpush.msra.mxu2 %v2600_v21 }
  0x1e   :  { %224 = vmatmul.f32.vlgmr.msra.gmra.mxu2 %v2479_v15  ;;  %335 = vmatpush.msrb.mxu1 %v2606_v22 }
  0x1f   :  { %296 = vmatpush.msrb.mxu0 %v2608_v23  ;;  %369 = vmatpush.msrb.mxu2 %v2545_v0 }
  0x20   :  { %297 = vmatmul.f32.vlgmr.msrb.gmra.mxu0 %v2479_v15  ;;  %336 = vmatpush.msrb.mxu1 %v2614_v24 }
  0x21   :  { %337 = vmatmul.f32.vlgmr.msrb.gmra.mxu1 %v2479_v15  ;;  %449 = vmatpush.msra.mxu0 %v2577_v12 }
  0x22   :  { %370 = vmatpush.msrb.mxu2 %v2553_v3  ;;  %411 = vmatpush.msrb.mxu3 %v2562_v7 }
  0x23   :  { %450 = vmatpush.msra.mxu0 %v2585_v14  ;;  %485 = vmatpush.msra.mxu1 %v2549_v2 }
  0x24   :  { %371 = vmatpush.msrb.mxu2 %v2560_v6  ;;  %412 = vmatpush.msrb.mxu3 %v2571_v10 }
  0x25   :  { %451 = vmatpush.msra.mxu0 %v2592_v18  ;;  %486 = vmatpush.msra.mxu1 %v2557_v5 }
  0x26   :  { %372 = vmatpush.msrb.mxu2 %v2569_v9  ;;  %565 = vmatpush.msra.mxu3 %v2588_v16 }
  0x27   :  { %452 = vmatpush.msra.mxu0 %v2600_v21  ;;  %487 = vmatpush.msra.mxu1 %v2566_v8 }
  0x28   :  { %525 = vmatpush.msra.mxu2 %v2583_v13  ;;  %566 = vmatpush.msra.mxu3 %v2596_v19 }
  0x29   :  { %603 = vmatpush.msrb.mxu0 %v2545_v0  ;;  %488 = vmatpush.msra.mxu1 %v2575_v11 }
  0x2a   :  { %526 = vmatpush.msra.mxu2 %v2590_v17  ;;  %567 = vmatpush.msra.mxu3 %v2606_v22 }
  0x2b   :  { %643 = vmatpush.msrb.mxu1 %v2547_v1  ;;  %604 = vmatpush.msrb.mxu0 %v2553_v3 }
  0x2c   :  { %527 = vmatpush.msra.mxu2 %v2598_v20  ;;  %568 = vmatpush.msra.mxu3 %v2614_v24 }
  0x2d   :  { %644 = vmatpush.msrb.mxu1 %v2555_v4  ;;  %605 = vmatpush.msrb.mxu0 %v2560_v6 }
  0x2e   :  { %528 = vmatpush.msra.mxu2 %v2608_v23 }
  0x2f   :  { %645 = vmatpush.msrb.mxu1 %v2562_v7  ;;  %606 = vmatpush.msrb.mxu0 %v2569_v9 }
  0x31   :  { %646 = vmatpush.msrb.mxu1 %v2571_v10 }
  0x94   :  { %v145_v27 = vpop.f32.mrf.mxu0 }
  0x95   :  { %v148_v28 = vadd.f32 %v145_v27, %v121_v25  ;;  %v185_v29 = vpop.f32.mrf.mxu1 }
  0x96   :  { %v188_v30 = vadd.f32 %v185_v29, %v122_v26 }
  0x97   :  { %v2064_v31 = vmul.f32 -1.442695, %v148_v28 }
  0x98   :  { %v2065_v32 = vmul.f32 -1.442695, %v188_v30  ;;  %v123_v30 = vld [vmem:[%s3249_s2] sm:$0x3] }
  0x99   :  { %2184 = vpow2.f32 %v2064_v31 }
  0x9a   :  { %2186 = vpow2.f32 %v2065_v32  ;;  %v2673_v32 = vld [vmem:[%s3254_s7 + $0x1] ss:$0 sm:$0xff] }
  0x9c   :  { %v258_v34 = vpop.f32.mrf.mxu3 }
  0x9d   :  { %v261_v36 = vadd.f32 %v2066_v33, %v258_v34  ;;  %v298_v37 = vpop.f32.mrf.mxu0 }
  0x9e   :  { %v301_v39 = vadd.f32 %v298_v37, %v238_v35  ;;  %v338_v37 = vpop.f32.mrf.mxu1 }
  0x9f   :  { %v2067_v38 = vmul.f32 -1.442695, %v261_v36  ;;  %v2185_v40 = vpop.eup %2184 }
  0xa0   :  { %v2187_v41 = vpop.eup %2186  ;;  %v152_v42 = vadd.f32 1.0, %v2185_v40  ;;  %v2068_v43 = vmul.f32 -1.442695, %v301_v39 }
  0xa1   :  { %2188 = vpow2.f32 %v2067_v38  ;;  %v192_v44 = vadd.f32 1.0, %v2187_v41  ;;  %v225_v57 = vpop.f32.mrf.mxu2 }
  0xa2   :  { %2190 = vrcp.f32 %v152_v42  ;;  %v164_v56 = vand.u32 2147483648, %v152_v42  ;;  %v162_v59 = vand.u32 2147483647, %v152_v42  ;;  %vm158_vm1 = vweird.f32 %v152_v42 }
  0xa3   :  { %2192 = vrcp.f32 %v192_v44  ;;  %v226_v63 = vadd.f32 %v2663_v55, %v225_v57  ;;  %vm198_vm4 = vweird.f32 %v192_v44  ;;  %v204_v33 = vand.u32 2147483648, %v192_v44  ;;  %v240_v57 = vld [vmem:[#allocation5 + $0xe] sm:$0x3] }
  0xa4   :  { %2194 = vpow2.f32 %v2068_v43  ;;  %v165_v25 = vor.u32 1.1754944e-38, %v164_v56  ;;  %vm163_vm3 = vcmp.eq.f32.partialorder %v162_v59, 8.507059e+37  ;;  %v202_v38 = vand.u32 2147483647, %v192_v44 }
  0xa6   :  { %vm203_vm10 = vcmp.eq.f32.partialorder %v202_v38, 8.507059e+37 }
  0xa7   :  { %v2189_v45 = vpop.eup %2188 }
  0xa8   :  { %v265_v46 = vadd.f32 1.0, %v2189_v45  ;;  %v2191_v47 = vpop.eup %2190 }
  0xa9   :  { %v2193_v48 = vpop.eup %2192  ;;  %v154_v49 = vmul.f32 %v2191_v47, %v152_v42  ;;  %vm159_vm0 = vweird.f32 %v2191_v47 }
  0xaa   :  { %2196 = vrcp.f32 %v265_v46  ;;  %v2195_v50 = vpop.eup %2194  ;;  %v194_v51 = vmul.f32 %v2193_v48, %v192_v44  ;;  %vm160_vm2 = vmor %vm158_vm1, %vm159_vm0  ;;  %vm199_vm5 = vweird.f32 %v2193_v48  ;;  %v277_v36 = vand.u32 2147483648, %v265_v46 }
  0xab   :  { %v2658_v52 = vadd.f32 1.0, %v2195_v50  ;;  %v155_v53 = vsub.f32 1.0, %v154_v49  ;;  %v275_v40 = vand.u32 2147483647, %v265_v46  ;;  %vm2676_vm7 = vmor %vm198_vm4, %vm199_vm5  ;;  %vm271_vm8 = vweird.f32 %v265_v46 }
  0xac   :  { %v195_v54 = vsub.f32 1.0, %v194_v51  ;;  %v339_v49 = vadd.f32 %v2673_v32, %v338_v37  ;;  %v205_v50 = vor.u32 1.1754944e-38, %v204_v33  ;;  %v278_v44 = vor.u32 1.1754944e-38, %v277_v36  ;;  %v2077_v36 = vld [vmem:[%s3250_s3 + $0xc] sm:$0x3] }
  0xad   :  { %2198 = vrcp.f32 %v2658_v52  ;;  %v156_v58 = vmul.f32 %v2191_v47, %v155_v53  ;;  %vm311_vm11 = vweird.f32 %v2658_v52  ;;  %vm276_vm12 = vcmp.eq.f32.partialorder %v275_v40, 8.507059e+37 }
  0xae   :  { %v196_v61 = vmul.f32 %v2193_v48, %v195_v54  ;;  %v315_v59 = vand.u32 2147483647, %v2658_v52  ;;  %vm124_vm0 = vcmask 261120  }
  0xaf   :  { %v157_v62 = vadd.f32 %v2191_v47, %v156_v58 }
  0xb0   :  { %v2197_v60 = vpop.eup %2196  ;;  %v197_v29 = vadd.f32 %v2193_v48, %v196_v61  ;;  %vm316_vm15 = vcmp.eq.f32.partialorder %v315_v59, 8.507059e+37 }
  0xb1   :  { %v267_v15 = vmul.f32 %v2197_v60, %v265_v46  ;;  %v161_v26 = vsel %vm160_vm2, %v2191_v47, %v157_v62  ;;  %vm272_vm6 = vweird.f32 %v2197_v60 }
  0xb2   :  { %v166_v31 = vsel %vm163_vm3, %v165_v25, %v161_v26  ;;  %v201_v45 = vsel %vm2676_vm7, %v2193_v48, %v197_v29  ;;  %vm273_vm9 = vmor %vm271_vm8, %vm272_vm6  ;;  %v317_v48 = vand.u32 2147483648, %v2658_v52 }
  0xb3   :  { %v268_v27 = vsub.f32 1.0, %v267_v15  ;;  %v2199_v28 = vpop.eup %2198  ;;  %v228_v35 = vmul.f32 %v226_v63, %v166_v31  ;;  %v206_v56 = vsel %vm203_vm10, %v205_v50, %v201_v45 }
  0xb4   :  { %v307_v34 = vmul.f32 %v2199_v28, %v2658_v52  ;;  %vm312_vm13 = vweird.f32 %v2199_v28  ;;  %v231_v61 = vsub.f32 1.0, %v206_v56  ;;  %v318_v25 = vor.u32 1.1754944e-38, %v317_v48 }
  0xb5   :  { %v269_v39 = vmul.f32 %v2197_v60, %v268_v27  ;;  %v229_v43 = vadd.f32 %v228_v35, %v123_v30  ;;  %vm313_vm14 = vmor %vm311_vm11, %vm312_vm13  ;;  %v2070_v35 = vld [vmem:[%s3248_s1 + $0x2] sm:$0x3] }
  0xb6   :  { %v308_v42 = vsub.f32 1.0, %v307_v34  ;;  %v2069_v34 = vld [vmem:[%s3247_s0 + $0x2] sm:$0x3] }
  0xb7   :  { %v270_v47 = vadd.f32 %v2197_v60, %v269_v39  ;;  %2200 = vtanh.f32 %v229_v43 }
  0xb8   :  { %v309_v51 = vmul.f32 %v2199_v28, %v308_v42 }
  0xb9   :  { %v274_v53 = vsel %vm273_vm9, %v2197_v60, %v270_v47  ;;  %v233_v60 = vmul.f32 0.0, %v206_v56 }
  0xba   :  { %v310_v54 = vadd.f32 %v2199_v28, %v309_v51  ;;  %v279_v58 = vsel %vm276_vm12, %v278_v44, %v274_v53 }
  0xbb   :  { %v341_v46 = vmul.f32 %v339_v49, %v279_v58  ;;  %v467_v49 = vld [vmem:[#allocation2 + $0xc] sm:$0x3] }
  0xbc   :  { %v314_v15 = vsel %vm313_vm14, %v2199_v28, %v310_v54 }
  0xbd   :  { %v342_v62 = vadd.f32 %v341_v46, %v240_v57  ;;  %v2201_v63 = vpop.eup %2200  ;;  %v319_v27 = vsel %vm316_vm15, %v318_v25, %v314_v15 }
  0xbe   :  { %v232_v26 = vmul.f32 %v2201_v63, %v231_v61  ;;  %v344_v52 = vsub.f32 1.0, %v319_v27  ;;  %v346_v31 = vmul.f32 0.0, %v319_v27 }
  0xbf   :  { %2202 = vtanh.f32 %v342_v62 }
  0xc0   :  { %v2686_v29 = vadd.f32 %v233_v60, %v232_v26 }
  0xc2   :  { %2072 = vmatmul.msk.f32.vlgmr.msrb.gmra.mxu2 %vm124_vm0, %v2686_v29  ;;  %2074 = vmatmul.msk.f32.vlgmr.msrb.gmra.mxu3 %vm124_vm0, %v2686_v29 }
  0xc3   :  { %2076 = vmatmul.msk.f32.vlgmr.msra.gmra.mxu0 %vm124_vm0, %v2686_v29  ;;  %719 = vmatpush.msrb.mxu3 %v2549_v2 }
  0xc4   :  { %683 = vmatpush.msrb.mxu2 %v2577_v12  ;;  %759 = vmatpush.msra.mxu0 %v2583_v13 }
  0xc5   :  { %v2203_v28 = vpop.eup %2202  ;;  %720 = vmatpush.msrb.mxu3 %v2557_v5 }
  0xc6   :  { %v345_v30 = vmul.f32 %v2203_v28, %v344_v52  ;;  %684 = vmatpush.msrb.mxu2 %v2585_v14  ;;  %760 = vmatpush.msra.mxu0 %v2590_v17 }
  0xc7   :  { %721 = vmatpush.msrb.mxu3 %v2566_v8 }
  0xc8   :  { %v2700_v33 = vadd.f32 %v346_v31, %v345_v30  ;;  %685 = vmatpush.msrb.mxu2 %v2592_v18  ;;  %761 = vmatpush.msra.mxu0 %v2598_v20 }
  0xc9   :  { %722 = vmatpush.msrb.mxu3 %v2575_v11 }
  0xca   :  { %2078 = vmatmul.msk.f32.vlgmr.msra.gmra.mxu1 %vm124_vm0, %v2700_v33  ;;  %2080 = vmatmul.msk.f32.vlgmr.msra.gmra.mxu2 %vm124_vm0, %v2700_v33 }
  0xcb   :  { %2082 = vmatmul.msk.f32.vlgmr.msra.gmra.mxu3 %vm124_vm0, %v2700_v33  ;;  %686 = vmatpush.msrb.mxu2 %v2600_v21 }
  0xcc   :  { %799 = vmatpush.msra.mxu1 %v2588_v16  ;;  %762 = vmatpush.msra.mxu0 %v2608_v23 }
  0xcd   :  { %837 = vmatpush.msra.mxu2 %v2545_v0  ;;  %877 = vmatpush.msra.mxu3 %v2547_v1 }
  0xce   :  { %800 = vmatpush.msra.mxu1 %v2596_v19 }
  0xcf   :  { %838 = vmatpush.msra.mxu2 %v2553_v3  ;;  %878 = vmatpush.msra.mxu3 %v2555_v4 }
  0xd0   :  { %801 = vmatpush.msra.mxu1 %v2606_v22 }
  0xd1   :  { %839 = vmatpush.msra.mxu2 %v2560_v6  ;;  %879 = vmatpush.msra.mxu3 %v2562_v7 }
  0xd2   :  { %802 = vmatpush.msra.mxu1 %v2614_v24 }
  0xd3   :  { %840 = vmatpush.msra.mxu2 %v2569_v9  ;;  %880 = vmatpush.msra.mxu3 %v2571_v10 }
 0x140   :  { %v454_v25 = vpop.f32.mrf.mxu0 }
 0x145   :  { %v374_v37 = vpop.f32.mrf.mxu2  ;;  %v414_v38 = vpop.f32.mrf.mxu3 }
 0x146   :  { %v377_v39 = vadd.f32 %v2069_v34, %v374_v37  ;;  %v417_v40 = vadd.f32 %v2070_v35, %v414_v38  ;;  %v455_v35 = vadd.f32 %v2663_v55, %v454_v25 }
 0x147   :  { %v490_v41 = vpop.f32.mrf.mxu1 }
 0x148   :  { %v493_v42 = vadd.f32 %v2077_v36, %v490_v41  ;;  %v2073_v43 = vmul.f32 -1.442695, %v377_v39  ;;  %v2075_v45 = vmul.f32 -1.442695, %v417_v40 }
 0x14a   :  { %v2079_v47 = vmul.f32 -1.442695, %v493_v42  ;;  %2204 = vpow2.f32 %v2073_v43 }
 0x14b   :  { %2206 = vpow2.f32 %v2075_v45 }
 0x14c   :  { %2208 = vpow2.f32 %v2079_v47 }
 0x14d   :  { %v530_v50 = vpop.f32.mrf.mxu2 }
 0x14e   :  { %v533_v51 = vadd.f32 %v530_v50, %v467_v49  ;;  %v570_v60 = vpop.f32.mrf.mxu3 }
 0x14f   :  { %v571_v37 = vadd.f32 %v2673_v32, %v570_v60 }
 0x150   :  { %v2205_v44 = vpop.eup %2204  ;;  %v2081_v53 = vmul.f32 -1.442695, %v533_v51 }
 0x151   :  { %v2207_v54 = vpop.eup %2206  ;;  %v381_v56 = vadd.f32 1.0, %v2205_v44 }
 0x152   :  { %v2209_v57 = vpop.eup %2208  ;;  %v2735_v58 = vadd.f32 1.0, %v2207_v54  ;;  %2210 = vpow2.f32 %v2081_v53  ;;  %v2071_v53 = vld [vmem:[%s3249_s2 + $0x2] sm:$0x3] }
 0x153   :  { %2212 = vrcp.f32 %v381_v56  ;;  %v497_v48 = vadd.f32 1.0, %v2209_v57  ;;  %v391_v52 = vand.u32 2147483647, %v381_v56  ;;  %v393_v28 = vand.u32 2147483648, %v381_v56 }
 0x154   :  { %2214 = vrcp.f32 %v2735_v58  ;;  %vm387_vm2 = vweird.f32 %v381_v56  ;;  %vm427_vm3 = vweird.f32 %v2735_v58  ;;  %v433_v44 = vand.u32 2147483648, %v2735_v58 }
 0x155   :  { %2216 = vrcp.f32 %v497_v48  ;;  %vm392_vm5 = vcmp.eq.f32.partialorder %v391_v52, 8.507059e+37  ;;  %v394_v41 = vor.u32 1.1754944e-38, %v393_v28  ;;  %v507_v42 = vand.u32 2147483647, %v497_v48  ;;  %v469_v28 = vld [vmem:[#allocation5 + $0xc] sm:$0x3] }
 0x156   :  { %v509_v43 = vand.u32 2147483648, %v497_v48  ;;  %vm503_vm8 = vweird.f32 %v497_v48  ;;  %v434_v52 = vor.u32 1.1754944e-38, %v433_v44 }
 0x157   :  { %vm508_vm10 = vcmp.eq.f32.partialorder %v507_v42, 8.507059e+37 }
 0x158   :  { %v2211_v46 = vpop.eup %2210 }
 0x159   :  { %v2213_v59 = vpop.eup %2212  ;;  %v2738_v61 = vadd.f32 1.0, %v2211_v46  ;;  %v431_v46 = vand.u32 2147483647, %v2735_v58 }
 0x15a   :  { %v2740_v62 = vpop.eup %2214  ;;  %v383_v63 = vmul.f32 %v2213_v59, %v381_v56  ;;  %vm388_vm1 = vweird.f32 %v2213_v59 }
 0x15b   :  { %v423_v15 = vmul.f32 %v2740_v62, %v2735_v58  ;;  %2218 = vrcp.f32 %v2738_v61  ;;  %v2217_v27 = vpop.eup %2216  ;;  %vm389_vm4 = vmor %vm387_vm2, %vm388_vm1  ;;  %vm428_vm7 = vweird.f32 %v2740_v62  ;;  %vm543_vm13 = vweird.f32 %v2738_v61 }
 0x15c   :  { %v384_v26 = vsub.f32 1.0, %v383_v63  ;;  %v499_v34 = vmul.f32 %v2217_v27, %v497_v48  ;;  %vm504_vm6 = vweird.f32 %v2217_v27  ;;  %v510_v63 = vor.u32 1.1754944e-38, %v509_v43  ;;  %vm2760_vm11 = vmor %vm427_vm3, %vm428_vm7 }
 0x15d   :  { %v424_v30 = vsub.f32 1.0, %v423_v15  ;;  %vm505_vm9 = vmor %vm503_vm8, %vm504_vm6  ;;  %v547_v48 = vand.u32 2147483647, %v2738_v61  ;;  %vm432_vm14 = vcmp.eq.f32.partialorder %v431_v46, 8.507059e+37 }
 0x15e   :  { %v385_v31 = vmul.f32 %v2213_v59, %v384_v26  ;;  %v500_v39 = vsub.f32 1.0, %v499_v34 }
 0x15f   :  { %v425_v36 = vmul.f32 %v2740_v62, %v424_v30  ;;  %vm548_vm1 = vcmp.eq.f32.partialorder %v547_v48, 8.507059e+37 }
 0x160   :  { %v386_v38 = vadd.f32 %v2213_v59, %v385_v31  ;;  %v501_v49 = vmul.f32 %v2217_v27, %v500_v39 }
 0x161   :  { %v2219_v40 = vpop.eup %2218  ;;  %v426_v51 = vadd.f32 %v2740_v62, %v425_v36 }
 0x162   :  { %v390_v45 = vsel %vm389_vm4, %v2213_v59, %v386_v38  ;;  %v539_v47 = vmul.f32 %v2219_v40, %v2738_v61  ;;  %v502_v57 = vadd.f32 %v2217_v27, %v501_v49  ;;  %v549_v59 = vand.u32 2147483648, %v2738_v61 }
 0x163   :  { %v395_v50 = vsel %vm392_vm5, %v394_v41, %v390_v45  ;;  %vm544_vm12 = vweird.f32 %v2219_v40  ;;  %v430_v31 = vsel %vm2760_vm11, %v2740_v62, %v426_v51  ;;  %v2084_v51 = vld [vmem:[%s3248_s1 + $0x4] sm:$0x3] }
 0x164   :  { %v457_v54 = vmul.f32 %v455_v35, %v395_v50  ;;  %v540_v56 = vsub.f32 1.0, %v539_v47  ;;  %v506_v26 = vsel %vm505_vm9, %v2217_v27, %v502_v57  ;;  %vm545_vm15 = vmor %vm543_vm13, %vm544_vm12  ;;  %v550_v35 = vor.u32 1.1754944e-38, %v549_v59  ;;  %v2083_v50 = vld [vmem:[%s3247_s0 + $0x4] sm:$0x3]  ;;  %v701_v59 = vld [vmem:[#allocation2 + $0xa] sm:$0x3] }
 0x165   :  { %v511_v30 = vsel %vm508_vm10, %v510_v63, %v506_v26  ;;  %v435_v38 = vsel %vm432_vm14, %v434_v52, %v430_v31  ;;  %v2091_v63 = vld [vmem:[%s3250_s3 + $0xa] sm:$0x3] }
 0x166   :  { %v541_v25 = vmul.f32 %v2219_v40, %v540_v56  ;;  %v458_v60 = vadd.f32 %v2071_v53, %v457_v54  ;;  %v573_v58 = vmul.f32 %v571_v37, %v511_v30  ;;  %v460_v41 = vsub.f32 1.0, %v435_v38 }
 0x167   :  { %v462_v62 = vmul.f32 %v435_v38, %v2686_v29 }
 0x168   :  { %v542_v34 = vadd.f32 %v2219_v40, %v541_v25  ;;  %2220 = vtanh.f32 %v458_v60  ;;  %v574_v27 = vadd.f32 %v573_v58, %v469_v28 }
 0x16a   :  { %v546_v36 = vsel %vm545_vm15, %v2219_v40, %v542_v34  ;;  %2222 = vtanh.f32 %v574_v27 }
 0x16b   :  { %v551_v39 = vsel %vm548_vm1, %v550_v35, %v546_v36 }
 0x16c   :  { %v576_v43 = vsub.f32 1.0, %v551_v39  ;;  %v578_v40 = vmul.f32 %v551_v39, %v2700_v33 }
 0x16e   :  { %v2221_v42 = vpop.eup %2220 }
 0x16f   :  { %v461_v45 = vmul.f32 %v2221_v42, %v460_v41 }
 0x170   :  { %v2223_v61 = vpop.eup %2222 }
 0x171   :  { %v2770_v47 = vadd.f32 %v462_v62, %v461_v45  ;;  %v577_v37 = vmul.f32 %v2223_v61, %v576_v43 }
 0x173   :  { %2086 = vmatmul.msk.f32.vlgmr.msrb.gmra.mxu0 %vm124_vm0, %v2770_v47  ;;  %2088 = vmatmul.msk.f32.vlgmr.msrb.gmra.mxu1 %vm124_vm0, %v2770_v47  ;;  %v2780_v49 = vadd.f32 %v578_v40, %v577_v37 }
 0x174   :  { %2090 = vmatmul.msk.f32.vlgmr.msrb.gmra.mxu2 %vm124_vm0, %v2770_v47  ;;  %917 = vmatpush.msrb.mxu0 %v2577_v12 }
 0x175   :  { %953 = vmatpush.msrb.mxu1 %v2549_v2  ;;  %993 = vmatpush.msrb.mxu2 %v2583_v13 }
 0x176   :  { %918 = vmatpush.msrb.mxu0 %v2585_v14  ;;  %2092 = vmatmul.msk.f32.vlgmr.msrb.gmra.mxu3 %vm124_vm0, %v2780_v49 }
 0x177   :  { %954 = vmatpush.msrb.mxu1 %v2557_v5  ;;  %1033 = vmatpush.msrb.mxu3 %v2588_v16 }
 0x178   :  { %919 = vmatpush.msrb.mxu0 %v2592_v18  ;;  %994 = vmatpush.msrb.mxu2 %v2590_v17 }
 0x179   :  { %955 = vmatpush.msrb.mxu1 %v2566_v8  ;;  %1034 = vmatpush.msrb.mxu3 %v2596_v19 }
 0x17a   :  { %920 = vmatpush.msrb.mxu0 %v2600_v21  ;;  %995 = vmatpush.msrb.mxu2 %v2598_v20 }
 0x17b   :  { %2094 = vmatmul.msk.f32.vlgmr.msra.gmra.mxu0 %vm124_vm0, %v2780_v49  ;;  %2096 = vmatmul.msk.f32.vlgmr.msra.gmra.mxu1 %vm124_vm0, %v2780_v49 }
 0x17c   :  { %956 = vmatpush.msrb.mxu1 %v2575_v11  ;;  %1035 = vmatpush.msrb.mxu3 %v2606_v22 }
 0x17d   :  { %1071 = vmatpush.msra.mxu0 %v2545_v0  ;;  %996 = vmatpush.msrb.mxu2 %v2608_v23 }
 0x17e   :  { %1111 = vmatpush.msra.mxu1 %v2547_v1  ;;  %1036 = vmatpush.msrb.mxu3 %v2614_v24 }
 0x17f   :  { %1072 = vmatpush.msra.mxu0 %v2553_v3 }
 0x180   :  { %1112 = vmatpush.msra.mxu1 %v2555_v4 }
 0x181   :  { %1073 = vmatpush.msra.mxu0 %v2560_v6 }
 0x182   :  { %1113 = vmatpush.msra.mxu1 %v2562_v7 }
 0x183   :  { %1074 = vmatpush.msra.mxu0 %v2569_v9 }
 0x184   :  { %1114 = vmatpush.msra.mxu1 %v2571_v10 }
 0x1f0   :  { %v608_v44 = vpop.f32.mrf.mxu0  ;;  %v648_v53 = vpop.f32.mrf.mxu1 }
 0x1f1   :  { %v611_v54 = vadd.f32 %v2083_v50, %v608_v44  ;;  %v651_v56 = vadd.f32 %v2084_v51, %v648_v53 }
 0x1f3   :  { %v2087_v57 = vmul.f32 -1.442695, %v611_v54  ;;  %v2089_v46 = vmul.f32 -1.442695, %v651_v56 }
 0x1f5   :  { %2224 = vpow2.f32 %v2087_v57 }
 0x1f6   :  { %2226 = vpow2.f32 %v2089_v46 }
 0x1f7   :  { %v688_v50 = vpop.f32.mrf.mxu2 }
 0x1f8   :  { %v764_v15 = vpop.f32.mrf.mxu0  ;;  %v689_v56 = vadd.f32 %v2663_v55, %v688_v50 }
 0x1f9   :  { %v767_v25 = vadd.f32 %v764_v15, %v701_v59  ;;  %v724_v26 = vpop.f32.mrf.mxu3  ;;  %v2085_v59 = vld [vmem:[%s3249_s2 + $0x4] sm:$0x3] }
 0x1fa   :  { %v727_v52 = vadd.f32 %v2091_v63, %v724_v26 }
 0x1fb   :  { %v2225_v60 = vpop.eup %2224  ;;  %v2095_v48 = vmul.f32 -1.442695, %v767_v25 }
 0x1fc   :  { %v2227_v28 = vpop.eup %2226  ;;  %v615_v30 = vadd.f32 1.0, %v2225_v60  ;;  %v2093_v34 = vmul.f32 -1.442695, %v727_v52 }
 0x1fd   :  { %v655_v31 = vadd.f32 1.0, %v2227_v28  ;;  %2228 = vpow2.f32 %v2095_v48 }
 0x1fe   :  { %2230 = vrcp.f32 %v615_v30  ;;  %v627_v62 = vand.u32 2147483648, %v615_v30  ;;  %v625_v37 = vand.u32 2147483647, %v615_v30  ;;  %vm621_vm3 = vweird.f32 %v615_v30 }
 0x1ff   :  { %2232 = vrcp.f32 %v655_v31  ;;  %v667_v25 = vand.u32 2147483648, %v655_v31  ;;  %vm661_vm7 = vweird.f32 %v655_v31  ;;  %v665_v60 = vand.u32 2147483647, %v655_v31 }
 0x200   :  { %2234 = vpow2.f32 %v2093_v34  ;;  %v628_v53 = vor.u32 1.1754944e-38, %v627_v62  ;;  %vm626_vm5 = vcmp.eq.f32.partialorder %v625_v37, 8.507059e+37 }
 0x201   :  { %vm666_vm9 = vcmp.eq.f32.partialorder %v665_v60, 8.507059e+37 }
 0x203   :  { %v2229_v58 = vpop.eup %2228 }
 0x204   :  { %v2231_v35 = vpop.eup %2230  ;;  %v2820_v36 = vadd.f32 1.0, %v2229_v58  ;;  %v668_v58 = vor.u32 1.1754944e-38, %v667_v25 }
 0x205   :  { %v2233_v27 = vpop.eup %2232  ;;  %v617_v38 = vmul.f32 %v2231_v35, %v615_v30  ;;  %vm622_vm2 = vweird.f32 %v2231_v35 }
 0x206   :  { %v2235_v39 = vpop.eup %2234  ;;  %v657_v41 = vmul.f32 %v2233_v27, %v655_v31  ;;  %2236 = vrcp.f32 %v2820_v36  ;;  %vm623_vm4 = vmor %vm621_vm3, %vm622_vm2  ;;  %vm662_vm6 = vweird.f32 %v2233_v27  ;;  %vm777_vm15 = vweird.f32 %v2820_v36 }
 0x207   :  { %v618_v42 = vsub.f32 1.0, %v617_v38  ;;  %v731_v43 = vadd.f32 1.0, %v2235_v39  ;;  %vm663_vm8 = vmor %vm661_vm7, %vm662_vm6 }
 0x208   :  { %v658_v45 = vsub.f32 1.0, %v657_v41 }
 0x209   :  { %v619_v61 = vmul.f32 %v2231_v35, %v618_v42  ;;  %2238 = vrcp.f32 %v731_v43  ;;  %v741_v39 = vand.u32 2147483647, %v731_v43  ;;  %vm737_vm11 = vweird.f32 %v731_v43 }
 0x20a   :  { %v659_v40 = vmul.f32 %v2233_v27, %v658_v45  ;;  %v804_v45 = vpop.f32.mrf.mxu1 }
 0x20b   :  { %v620_v51 = vadd.f32 %v2231_v35, %v619_v61  ;;  %vm742_vm13 = vcmp.eq.f32.partialorder %v741_v39, 8.507059e+37 }
 0x20c   :  { %v2823_v44 = vpop.eup %2236  ;;  %v660_v46 = vadd.f32 %v2233_v27, %v659_v40 }
 0x20d   :  { %v624_v54 = vsel %vm623_vm4, %v2231_v35, %v620_v51  ;;  %v773_v57 = vmul.f32 %v2823_v44, %v2820_v36  ;;  %v743_v35 = vand.u32 2147483648, %v731_v43  ;;  %vm778_vm14 = vweird.f32 %v2823_v44  ;;  %v703_v51 = vld [vmem:[#allocation5 + $0xa] sm:$0x3] }
 0x20e   :  { %v629_v63 = vsel %vm626_vm5, %v628_v53, %v624_v54  ;;  %v664_v30 = vsel %vm663_vm8, %v2233_v27, %v660_v46  ;;  %v805_v27 = vadd.f32 %v2673_v32, %v804_v45  ;;  %v781_v46 = vand.u32 2147483647, %v2820_v36  ;;  %vm779_vm1 = vmor %vm777_vm15, %vm778_vm14 }
 0x20f   :  { %v2239_v15 = vpop.eup %2238  ;;  %v691_v26 = vmul.f32 %v689_v56, %v629_v63  ;;  %v774_v28 = vsub.f32 1.0, %v773_v57  ;;  %v669_v41 = vsel %vm666_vm9, %v668_v58, %v664_v30  ;;  %v744_v31 = vor.u32 1.1754944e-38, %v743_v35 }
 0x210   :  { %v733_v52 = vmul.f32 %v2239_v15, %v731_v43  ;;  %vm738_vm10 = vweird.f32 %v2239_v15  ;;  %v694_v61 = vsub.f32 1.0, %v669_v41  ;;  %v783_v56 = vand.u32 2147483648, %v2820_v36 }
 0x211   :  { %v692_v48 = vadd.f32 %v2085_v59, %v691_v26  ;;  %v775_v42 = vmul.f32 %v2823_v44, %v774_v28  ;;  %vm739_vm12 = vmor %vm737_vm11, %vm738_vm10  ;;  %v696_v43 = vmul.f32 %v669_v41, %v2770_v47  ;;  %vm782_vm2 = vcmp.eq.f32.partialorder %v781_v46, 8.507059e+37 }
 0x212   :  { %v734_v34 = vsub.f32 1.0, %v733_v52  ;;  %v784_v25 = vor.u32 1.1754944e-38, %v783_v56 }
 0x213   :  { %2240 = vtanh.f32 %v692_v48  ;;  %v776_v50 = vadd.f32 %v2823_v44, %v775_v42 }
 0x214   :  { %v735_v38 = vmul.f32 %v2239_v15, %v734_v34 }
 0x216   :  { %v736_v62 = vadd.f32 %v2239_v15, %v735_v38 }
 0x218   :  { %v740_v37 = vsel %vm739_vm12, %v2239_v15, %v736_v62  ;;  %v780_v15 = vsel %vm779_vm1, %v2823_v44, %v776_v50 }
 0x219   :  { %v2241_v40 = vpop.eup %2240  ;;  %v745_v53 = vsel %vm742_vm13, %v744_v31, %v740_v37  ;;  %v785_v36 = vsel %vm782_vm2, %v784_v25, %v780_v15  ;;  %v2111_v25 = vld [vmem:[%s3247_s0 + $0x8] sm:$0x3] }
 0x21a   :  { %v695_v54 = vmul.f32 %v2241_v40, %v694_v61  ;;  %v807_v57 = vmul.f32 %v805_v27, %v745_v53  ;;  %v810_v44 = vsub.f32 1.0, %v785_v36  ;;  %v812_v60 = vmul.f32 %v785_v36, %v2780_v49 }
 0x21c   :  { %v808_v59 = vadd.f32 %v807_v57, %v703_v51  ;;  %v2839_v63 = vadd.f32 %v696_v43, %v695_v54 }
 0x21e   :  { %2242 = vtanh.f32 %v808_v59  ;;  %2100 = vmatmul.msk.f32.vlgmr.msra.gmra.mxu2 %vm124_vm0, %v2839_v63  ;;  %2102 = vmatmul.msk.f32.vlgmr.msra.gmra.mxu3 %vm124_vm0, %v2839_v63  ;;  %v2099_v59 = vld [vmem:[%s3249_s2 + $0x6] sm:$0x3] }
 0x21f   :  { %2104 = vmatmul.msk.f32.vlgmr.msrb.gmra.mxu0 %vm124_vm0, %v2839_v63  ;;  %1187 = vmatpush.msra.mxu3 %v2549_v2 }
 0x220   :  { %1151 = vmatpush.msra.mxu2 %v2577_v12  ;;  %1227 = vmatpush.msrb.mxu0 %v2583_v13 }
 0x221   :  { %1188 = vmatpush.msra.mxu3 %v2557_v5 }
 0x222   :  { %1152 = vmatpush.msra.mxu2 %v2585_v14  ;;  %1228 = vmatpush.msrb.mxu0 %v2590_v17  ;;  %v935_v14 = vld [vmem:[#allocation2 + $0x8] sm:$0x3] }
 0x223   :  { %1189 = vmatpush.msra.mxu3 %v2566_v8 }
 0x224   :  { %v2243_v26 = vpop.eup %2242  ;;  %1153 = vmatpush.msra.mxu2 %v2592_v18  ;;  %1229 = vmatpush.msrb.mxu0 %v2598_v20 }
 0x225   :  { %v811_v2 = vmul.f32 %v2243_v26, %v810_v44  ;;  %1190 = vmatpush.msra.mxu3 %v2575_v11 }
 0x226   :  { %1154 = vmatpush.msra.mxu2 %v2600_v21  ;;  %1230 = vmatpush.msrb.mxu0 %v2608_v23 }
 0x227   :  { %v2861_v5 = vadd.f32 %v812_v60, %v811_v2 }
 0x229   :  { %2106 = vmatmul.msk.f32.vlgmr.msrb.gmra.mxu1 %vm124_vm0, %v2861_v5  ;;  %2108 = vmatmul.msk.f32.vlgmr.msrb.gmra.mxu2 %vm124_vm0, %v2861_v5 }
 0x22a   :  { %2110 = vmatmul.msk.f32.vlgmr.msrb.gmra.mxu3 %vm124_vm0, %v2861_v5  ;;  %1267 = vmatpush.msrb.mxu1 %v2588_v16 }
 0x22b   :  { %1305 = vmatpush.msrb.mxu2 %v2545_v0  ;;  %1345 = vmatpush.msrb.mxu3 %v2547_v1  ;;  %v2097_v0 = vld [vmem:[%s3247_s0 + $0x6] sm:$0x3] }
 0x22c   :  { %1268 = vmatpush.msrb.mxu1 %v2596_v19  ;;  %v2098_v1 = vld [vmem:[%s3248_s1 + $0x6] sm:$0x3] }
 0x22d   :  { %1306 = vmatpush.msrb.mxu2 %v2553_v3  ;;  %1346 = vmatpush.msrb.mxu3 %v2555_v4 }
 0x22e   :  { %1269 = vmatpush.msrb.mxu1 %v2606_v22 }
 0x22f   :  { %1307 = vmatpush.msrb.mxu2 %v2560_v6  ;;  %1347 = vmatpush.msrb.mxu3 %v2562_v7 }
 0x230   :  { %1270 = vmatpush.msrb.mxu1 %v2614_v24 }
 0x231   :  { %1308 = vmatpush.msrb.mxu2 %v2569_v9  ;;  %1348 = vmatpush.msrb.mxu3 %v2571_v10  ;;  %v2105_v9 = vld [vmem:[%s3250_s3 + $0x8] sm:$0x3] }
 0x29c   :  { %v922_v42 = vpop.f32.mrf.mxu0 }
 0x29d   :  { %v923_v27 = vadd.f32 %v2663_v55, %v922_v42  ;;  %v2928_v42 = vld [vmem:[#allocation7 + $0x90] sm:$0xff] }
 0x2a1   :  { %v842_v3 = vpop.f32.mrf.mxu2  ;;  %v882_v4 = vpop.f32.mrf.mxu3 }
 0x2a2   :  { %v845_v8 = vadd.f32 %v2097_v0, %v842_v3  ;;  %v885_v6 = vadd.f32 %v2098_v1, %v882_v4 }
 0x2a4   :  { %v2101_v11 = vmul.f32 -1.442695, %v845_v8  ;;  %v2103_v7 = vmul.f32 -1.442695, %v885_v6  ;;  %v937_v6 = vld [vmem:[#allocation5 + $0x8] sm:$0x3] }
 0x2a6   :  { %2244 = vpow2.f32 %v2101_v11  ;;  %v958_v10 = vpop.f32.mrf.mxu1 }
 0x2a7   :  { %2246 = vpow2.f32 %v2103_v7  ;;  %v961_v12 = vadd.f32 %v2105_v9, %v958_v10 }
 0x2a9   :  { %v2107_v13 = vmul.f32 -1.442695, %v961_v12 }
 0x2ab   :  { %2248 = vpow2.f32 %v2107_v13 }
 0x2ac   :  { %v2245_v16 = vpop.eup %2244  ;;  %v998_v17 = vpop.f32.mrf.mxu2 }
 0x2ad   :  { %v2247_v18 = vpop.eup %2246  ;;  %v849_v19 = vadd.f32 1.0, %v2245_v16  ;;  %v1001_v20 = vadd.f32 %v998_v17, %v935_v14  ;;  %v1038_v46 = vpop.f32.mrf.mxu3 }
 0x2ae   :  { %v889_v21 = vadd.f32 1.0, %v2247_v18  ;;  %v1039_v60 = vadd.f32 %v2673_v32, %v1038_v46  ;;  %v2979_v46 = vld [vmem:[#allocation7 + $0x8] sm:$0xff] }
 0x2af   :  { %2250 = vrcp.f32 %v849_v19  ;;  %v2109_v23 = vmul.f32 -1.442695, %v1001_v20  ;;  %v859_v35 = vand.u32 2147483647, %v849_v19  ;;  %v861_v38 = vand.u32 2147483648, %v849_v19 }
 0x2b0   :  { %2252 = vrcp.f32 %v889_v21  ;;  %vm855_vm4 = vweird.f32 %v849_v19  ;;  %vm895_vm9 = vweird.f32 %v889_v21  ;;  %v901_v55 = vand.u32 2147483648, %v889_v21 }
 0x2b1   :  { %v2249_v22 = vpop.eup %2248  ;;  %2254 = vpow2.f32 %v2109_v23  ;;  %vm860_vm6 = vcmp.eq.f32.partialorder %v859_v35, 8.507059e+37  ;;  %v862_v40 = vor.u32 1.1754944e-38, %v861_v38  ;;  %v899_v36 = vand.u32 2147483647, %v889_v21  ;;  %v2917_v35 = vld [vmem:[#allocation7 + $0x98] sm:$0xff] }
 0x2b2   :  { %v965_v24 = vadd.f32 1.0, %v2249_v22  ;;  %v902_v8 = vor.u32 1.1754944e-38, %v901_v55  ;;  %v2988_v55 = vld [vmem:[#allocation7 + $0x20] sm:$0xff] }
 0x2b3   :  { %vm900_vm14 = vcmp.eq.f32.partialorder %v899_v36, 8.507059e+37  ;;  %v2112_v36 = vld [vmem:[%s3248_s1 + $0x8] sm:$0x3] }
 0x2b4   :  { %2256 = vrcp.f32 %v965_v24  ;;  %v975_v53 = vand.u32 2147483647, %v965_v24  ;;  %v977_v54 = vand.u32 2147483648, %v965_v24  ;;  %vm971_vm11 = vweird.f32 %v965_v24 }
 0x2b5   :  { %v2251_v52 = vpop.eup %2250 }
 0x2b6   :  { %v2253_v48 = vpop.eup %2252  ;;  %v851_v28 = vmul.f32 %v2251_v52, %v849_v19  ;;  %vm856_vm3 = vweird.f32 %v2251_v52  ;;  %v978_v2 = vor.u32 1.1754944e-38, %v977_v54  ;;  %vm976_vm13 = vcmp.eq.f32.partialorder %v975_v53, 8.507059e+37  ;;  %v2964_v53 = vld [vmem:[#allocation7 + $0xa8] sm:$0xff]  ;;  %v2967_v54 = vld [vmem:[#allocation7 + $0x38] sm:$0xff] }
 0x2b7   :  { %v891_v30 = vmul.f32 %v2253_v48, %v889_v21  ;;  %v2255_v58 = vpop.eup %2254  ;;  %vm857_vm5 = vmor %vm855_vm4, %vm856_vm3  ;;  %vm896_vm7 = vweird.f32 %v2253_v48 }
 0x2b8   :  { %v852_v34 = vsub.f32 1.0, %v851_v28  ;;  %v1005_v62 = vadd.f32 1.0, %v2255_v58  ;;  %vm2894_vm10 = vmor %vm895_vm9, %vm896_vm7  ;;  %v2914_v58 = vld [vmem:[#allocation7 + $0x78] sm:$0xff] }
 0x2b9   :  { %v892_v39 = vsub.f32 1.0, %v891_v30 }
 0x2ba   :  { %v2257_v41 = vpop.eup %2256  ;;  %v853_v45 = vmul.f32 %v2251_v52, %v852_v34  ;;  %2258 = vrcp.f32 %v1005_v62  ;;  %v1017_v10 = vand.u32 2147483648, %v1005_v62  ;;  %v1015_v14 = vand.u32 2147483647, %v1005_v62  ;;  %v2911_v34 = vld [vmem:[#allocation7 + $0x58] sm:$0xff] }
 0x2bb   :  { %v893_v31 = vmul.f32 %v2253_v48, %v892_v39  ;;  %v967_v61 = vmul.f32 %v2257_v41, %v965_v24  ;;  %vm972_vm8 = vweird.f32 %v2257_v41  ;;  %vm1011_vm1 = vweird.f32 %v1005_v62  ;;  %v2922_v39 = vld [vmem:[#allocation7 + $0x50] sm:$0xff] }
 0x2bc   :  { %v854_v37 = vadd.f32 %v2251_v52, %v853_v45  ;;  %vm973_vm12 = vmor %vm971_vm11, %vm972_vm8  ;;  %v1018_v19 = vor.u32 1.1754944e-38, %v1017_v10  ;;  %vm1016_vm3 = vcmp.eq.f32.partialorder %v1015_v14, 8.507059e+37  ;;  %v2933_v45 = vld [vmem:[#allocation7 + $0x48] sm:$0xff] }
 0x2bd   :  { %v968_v50 = vsub.f32 1.0, %v967_v61  ;;  %v894_v57 = vadd.f32 %v2253_v48, %v893_v31  ;;  %v2939_v31 = vld [vmem:[#allocation7 + $0x68] sm:$0xff]  ;;  %v2942_v61 = vld [vmem:[#allocation7 + $0x40] sm:$0xff] }
 0x2be   :  { %v858_v51 = vsel %vm857_vm5, %v2251_v52, %v854_v37  ;;  %v2945_v37 = vld [vmem:[#allocation7 + $0x88] sm:$0xff] }
 0x2bf   :  { %v863_v56 = vsel %vm860_vm6, %v862_v40, %v858_v51  ;;  %v969_v43 = vmul.f32 %v2257_v41, %v968_v50  ;;  %v898_v4 = vsel %vm2894_vm10, %v2253_v48, %v894_v57  ;;  %v2955_v40 = vld [vmem:[#allocation7 + $0x60] sm:$0xff]  ;;  %v2961_v51 = vld [vmem:[#allocation7 + $0x18] sm:$0xff] }
 0x2c0   :  { %v925_v15 = vmul.f32 %v923_v27, %v863_v56  ;;  %v2259_v26 = vpop.eup %2258  ;;  %v903_v12 = vsel %vm900_vm14, %v902_v8, %v898_v4  ;;  %v2952_v27 = vld [vmem:[#allocation7 + $0xb0] sm:$0xff]  ;;  %v2958_v50 = vld [vmem:[#allocation7 + $0x80] sm:$0xff] }
 0x2c1   :  { %v970_v44 = vadd.f32 %v2257_v41, %v969_v43  ;;  %v1007_v1 = vmul.f32 %v2259_v26, %v1005_v62  ;;  %vm1012_vm15 = vweird.f32 %v2259_v26  ;;  %v928_v17 = vsub.f32 1.0, %v903_v12  ;;  %v2936_v62 = vld [vmem:[#allocation7 + $0xb8] sm:$0xff]  ;;  %v2970_v56 = vld [vmem:[#allocation7 + $0x10] sm:$0xff]  ;;  %v2973_v57 = vld [vmem:[#allocation7 + $0xa0] sm:$0xff] }
 0x2c2   :  { %v926_v0 = vadd.f32 %v2099_v59, %v925_v15  ;;  %vm1013_vm2 = vmor %vm1011_vm1, %vm1012_vm15  ;;  %v930_v22 = vmul.f32 %v903_v12, %v2839_v63  ;;  %v2976_v43 = vld [vmem:[#allocation7 + $0x30] sm:$0xff]  ;;  %v2982_v59 = vld [vmem:[#allocation7 + $0x28] sm:$0xff] }
 0x2c3   :  { %v974_v3 = vsel %vm973_vm12, %v2257_v41, %v970_v44  ;;  %v1008_v7 = vsub.f32 1.0, %v1007_v1  ;;  %v2925_v41 = vld [vmem:[#allocation7 + $0x70] sm:$0xff]  ;;  %v2985_v15 = vld [vmem:[#allocation7] sm:$0xff] }
 0x2c4   :  { %v979_v11 = vsel %vm976_vm13, %v978_v2, %v974_v3  ;;  %2260 = vtanh.f32 %v926_v0  ;;  %v1169_v3 = vld [vmem:[#allocation2 + $0x6] sm:$0x3] }
 0x2c5   :  { %v1041_v9 = vmul.f32 %v1039_v60, %v979_v11  ;;  %v1009_v13 = vmul.f32 %v2259_v26, %v1008_v7  ;;  %v2119_v8 = vld [vmem:[%s3250_s3 + $0x6] sm:$0x3] }
 0x2c7   :  { %v1042_v32 = vadd.f32 %v1041_v9, %v937_v6  ;;  %v1010_v16 = vadd.f32 %v2259_v26, %v1009_v13 }
 0x2c9   :  { %2262 = vtanh.f32 %v1042_v32  ;;  %v1014_v20 = vsel %vm1013_vm2, %v2259_v26, %v1010_v16 }
 0x2ca   :  { %v2261_v18 = vpop.eup %2260  ;;  %v1019_v23 = vsel %vm1016_vm3, %v1018_v19, %v1014_v20 }
 0x2cb   :  { %v929_v21 = vmul.f32 %v2261_v18, %v928_v17  ;;  %v1044_v24 = vsub.f32 1.0, %v1019_v23  ;;  %v1046_v30 = vmul.f32 %v1019_v23, %v2861_v5 }
 0x2cd   :  { %v2902_v52 = vadd.f32 %v930_v22, %v929_v21 }
 0x2cf   :  { %v2263_v48 = vpop.eup %2262  ;;  %2114 = vmatmul.msk.f32.vlgmr.msra.gmra.mxu0 %vm124_vm0, %v2902_v52  ;;  %2116 = vmatmul.msk.f32.vlgmr.msra.gmra.mxu1 %vm124_vm0, %v2902_v52 }
 0x2d0   :  { %v1045_v28 = vmul.f32 %v2263_v48, %v1044_v24  ;;  %2118 = vmatmul.msk.f32.vlgmr.msra.gmra.mxu2 %vm124_vm0, %v2902_v52  ;;  %1385 = vmatpush.msra.mxu0 %v2911_v34 }
 0x2d1   :  { %1421 = vmatpush.msra.mxu1 %v2914_v58  ;;  %1461 = vmatpush.msra.mxu2 %v2917_v35 }
 0x2d2   :  { %v2920_v38 = vadd.f32 %v1046_v30, %v1045_v28  ;;  %1386 = vmatpush.msra.mxu0 %v2922_v39 }
 0x2d3   :  { %1422 = vmatpush.msra.mxu1 %v2925_v41  ;;  %1462 = vmatpush.msra.mxu2 %v2928_v42 }
 0x2d4   :  { %2120 = vmatmul.msk.f32.vlgmr.msra.gmra.mxu3 %vm124_vm0, %v2920_v38  ;;  %1387 = vmatpush.msra.mxu0 %v2933_v45 }
 0x2d5   :  { %1501 = vmatpush.msra.mxu3 %v2936_v62  ;;  %1423 = vmatpush.msra.mxu1 %v2939_v31 }
 0x2d6   :  { %1388 = vmatpush.msra.mxu0 %v2942_v61  ;;  %1463 = vmatpush.msra.mxu2 %v2945_v37 }
 0x2d7   :  { %2122 = vmatmul.msk.f32.vlgmr.msrb.gmra.mxu0 %vm124_vm0, %v2920_v38  ;;  %2124 = vmatmul.msk.f32.vlgmr.msrb.gmra.mxu1 %vm124_vm0, %v2920_v38 }
 0x2d8   :  { %1502 = vmatpush.msra.mxu3 %v2952_v27  ;;  %1424 = vmatpush.msra.mxu1 %v2955_v40 }
 0x2d9   :  { %1464 = vmatpush.msra.mxu2 %v2958_v50  ;;  %1539 = vmatpush.msrb.mxu0 %v2961_v51 }
 0x2da   :  { %1503 = vmatpush.msra.mxu3 %v2964_v53  ;;  %1579 = vmatpush.msrb.mxu1 %v2967_v54 }
 0x2db   :  { %1540 = vmatpush.msrb.mxu0 %v2970_v56 }
 0x2dc   :  { %1504 = vmatpush.msra.mxu3 %v2973_v57  ;;  %1580 = vmatpush.msrb.mxu1 %v2976_v43 }
 0x2dd   :  { %1541 = vmatpush.msrb.mxu0 %v2979_v46 }
 0x2de   :  { %1581 = vmatpush.msrb.mxu1 %v2982_v59 }
 0x2df   :  { %1542 = vmatpush.msrb.mxu0 %v2985_v15 }
 0x2e0   :  { %1582 = vmatpush.msrb.mxu1 %v2988_v55 }
 0x34c   :  { %v1076_v44 = vpop.f32.mrf.mxu0  ;;  %v1116_v26 = vpop.f32.mrf.mxu1 }
 0x34d   :  { %v1079_v2 = vadd.f32 %v2111_v25, %v1076_v44  ;;  %v1119_v60 = vadd.f32 %v2112_v36, %v1116_v26 }
 0x34f   :  { %v2115_v0 = vmul.f32 -1.442695, %v1079_v2  ;;  %v2117_v1 = vmul.f32 -1.442695, %v1119_v60 }
 0x351   :  { %2264 = vpow2.f32 %v2115_v0 }
 0x352   :  { %2266 = vpow2.f32 %v2117_v1  ;;  %v3008_v1 = vld [vmem:[%s3254_s7] ss:$0 sm:$0xff] }
 0x353   :  { %v1156_v44 = vpop.f32.mrf.mxu2 }
 0x354   :  { %v1232_v4 = vpop.f32.mrf.mxu0 }
 0x355   :  { %v1235_v6 = vadd.f32 %v1232_v4, %v1169_v3  ;;  %v1157_v3 = vadd.f32 %v3008_v1, %v1156_v44 }
 0x357   :  { %v2265_v11 = vpop.eup %2264  ;;  %v1192_v7 = vpop.f32.mrf.mxu3  ;;  %v2123_v9 = vmul.f32 -1.442695, %v1235_v6 }
 0x358   :  { %v2267_v10 = vpop.eup %2266  ;;  %v1083_v12 = vadd.f32 1.0, %v2265_v11  ;;  %v1195_v13 = vadd.f32 %v2119_v8, %v1192_v7  ;;  %v2113_v8 = vld [vmem:[%s3249_s2 + $0x8] sm:$0x3] }
 0x359   :  { %v1123_v14 = vadd.f32 1.0, %v2267_v10  ;;  %2268 = vpow2.f32 %v2123_v9 }
 0x35a   :  { %2270 = vrcp.f32 %v1083_v12  ;;  %v2121_v32 = vmul.f32 -1.442695, %v1195_v13  ;;  %v1095_v48 = vand.u32 2147483648, %v1083_v12  ;;  %v1093_v30 = vand.u32 2147483647, %v1083_v12 }
 0x35b   :  { %2272 = vrcp.f32 %v1123_v14  ;;  %vm1089_vm5 = vweird.f32 %v1083_v12  ;;  %v1135_v11 = vand.u32 2147483648, %v1123_v14  ;;  %vm1129_vm9 = vweird.f32 %v1123_v14 }
 0x35c   :  { %2274 = vpow2.f32 %v2121_v32  ;;  %v1096_v60 = vor.u32 1.1754944e-38, %v1095_v48  ;;  %vm1094_vm7 = vcmp.eq.f32.partialorder %v1093_v30, 8.507059e+37  ;;  %v1133_v10 = vand.u32 2147483647, %v1123_v14 }
 0x35e   :  { %vm1134_vm11 = vcmp.eq.f32.partialorder %v1133_v10, 8.507059e+37 }
 0x35f   :  { %v2269_v16 = vpop.eup %2268 }
 0x360   :  { %v2271_v17 = vpop.eup %2270  ;;  %v3000_v18 = vadd.f32 1.0, %v2269_v16 }
 0x361   :  { %v2273_v19 = vpop.eup %2272  ;;  %v1085_v20 = vmul.f32 %v2271_v17, %v1083_v12  ;;  %vm1090_vm4 = vweird.f32 %v2271_v17 }
 0x362   :  { %v1125_v21 = vmul.f32 %v2273_v19, %v1123_v14  ;;  %2276 = vrcp.f32 %v3000_v18  ;;  %v2275_v23 = vpop.eup %2274  ;;  %vm1091_vm6 = vmor %vm1089_vm5, %vm1090_vm4  ;;  %vm1130_vm8 = vweird.f32 %v2273_v19  ;;  %vm1245_vm2 = vweird.f32 %v3000_v18 }
 0x363   :  { %v1086_v22 = vsub.f32 1.0, %v1085_v20  ;;  %v1199_v25 = vadd.f32 1.0, %v2275_v23  ;;  %vm1131_vm10 = vmor %vm1129_vm9, %vm1130_vm8  ;;  %v1249_v10 = vand.u32 2147483647, %v3000_v18 }
 0x364   :  { %v1126_v24 = vsub.f32 1.0, %v1125_v21 }
 0x365   :  { %v1087_v28 = vmul.f32 %v2271_v17, %v1086_v22  ;;  %2278 = vrcp.f32 %v1199_v25  ;;  %v1211_v23 = vand.u32 2147483648, %v1199_v25  ;;  %v1209_v48 = vand.u32 2147483647, %v1199_v25 }
 0x366   :  { %v1127_v36 = vmul.f32 %v2273_v19, %v1126_v24  ;;  %vm1205_vm13 = vweird.f32 %v1199_v25  ;;  %vm1250_vm4 = vcmp.eq.f32.partialorder %v1249_v10, 8.507059e+37 }
 0x367   :  { %v1088_v26 = vadd.f32 %v2271_v17, %v1087_v28  ;;  %v1272_v28 = vpop.f32.mrf.mxu1  ;;  %vm1210_vm15 = vcmp.eq.f32.partialorder %v1209_v48, 8.507059e+37 }
 0x368   :  { %v3003_v2 = vpop.eup %2276  ;;  %v1128_v4 = vadd.f32 %v2273_v19, %v1127_v36 }
 0x369   :  { %v1092_v0 = vsel %vm1091_vm6, %v2271_v17, %v1088_v26  ;;  %v1241_v9 = vmul.f32 %v3003_v2, %v3000_v18  ;;  %v1136_v17 = vor.u32 1.1754944e-38, %v1135_v11  ;;  %v3020_v26 = vld [vmem:[%s3254_s7 + $0x1] ss:$0 sm:$0xff]  ;;  %vm1246_vm1 = vweird.f32 %v3003_v2 }
 0x36a   :  { %v1097_v6 = vsel %vm1094_vm7, %v1096_v60, %v1092_v0  ;;  %v1132_v32 = vsel %vm1131_vm10, %v2273_v19, %v1128_v4  ;;  %v1212_v19 = vor.u32 1.1754944e-38, %v1211_v23  ;;  %v1273_v60 = vadd.f32 %v3020_v26, %v1272_v28  ;;  %vm1247_vm3 = vmor %vm1245_vm2, %vm1246_vm1 }
 0x36b   :  { %v1159_v7 = vmul.f32 %v1157_v3, %v1097_v6  ;;  %v2279_v12 = vpop.eup %2278  ;;  %v1242_v20 = vsub.f32 1.0, %v1241_v9  ;;  %v1137_v22 = vsel %vm1134_vm11, %v1136_v17, %v1132_v32  ;;  %v1251_v11 = vand.u32 2147483648, %v3000_v18 }
 0x36c   :  { %v1201_v16 = vmul.f32 %v2279_v12, %v1199_v25  ;;  %vm1206_vm12 = vweird.f32 %v2279_v12  ;;  %v1162_v36 = vsub.f32 1.0, %v1137_v22  ;;  %v1164_v4 = vmul.f32 %v1137_v22, %v2902_v52  ;;  %v1171_v25 = vld [vmem:[#allocation5 + $0x6] sm:$0x3] }
 0x36d   :  { %v1160_v13 = vadd.f32 %v2113_v8, %v1159_v7  ;;  %v1243_v30 = vmul.f32 %v3003_v2, %v1242_v20  ;;  %vm1207_vm14 = vmor %vm1205_vm13, %vm1206_vm12  ;;  %v1252_v32 = vor.u32 1.1754944e-38, %v1251_v11 }
 0x36e   :  { %v1202_v21 = vsub.f32 1.0, %v1201_v16 }
 0x36f   :  { %2280 = vtanh.f32 %v1160_v13  ;;  %v1244_v8 = vadd.f32 %v3003_v2, %v1243_v30 }
 0x370   :  { %v1203_v24 = vmul.f32 %v2279_v12, %v1202_v21 }
 0x371   :  { %v1248_v13 = vsel %vm1247_vm3, %v3003_v2, %v1244_v8 }
 0x372   :  { %v1204_v14 = vadd.f32 %v2279_v12, %v1203_v24  ;;  %v1253_v18 = vsel %vm1250_vm4, %v1252_v32, %v1248_v13 }
 0x373   :  { %v1278_v2 = vsub.f32 1.0, %v1253_v18  ;;  %v1280_v20 = vmul.f32 %v1253_v18, %v2920_v38 }
 0x374   :  { %v1208_v3 = vsel %vm1207_vm14, %v2279_v12, %v1204_v14 }
 0x375   :  { %v2281_v44 = vpop.eup %2280  ;;  %v1213_v6 = vsel %vm1210_vm15, %v1212_v19, %v1208_v3 }
 0x376   :  { %v1163_v0 = vmul.f32 %v2281_v44, %v1162_v36  ;;  %v1275_v7 = vmul.f32 %v1273_v60, %v1213_v6  ;;  %v1403_v44 = vld [vmem:[#allocation2 + $0x4] sm:$0x3] }
 0x378   :  { %v3027_v9 = vadd.f32 %v1164_v4, %v1163_v0  ;;  %v1276_v12 = vadd.f32 %v1275_v7, %v1171_v25 }
 0x37a   :  { %2128 = vmatmul.msk.f32.vlgmr.msrb.gmra.mxu2 %vm124_vm0, %v3027_v9  ;;  %2130 = vmatmul.msk.f32.vlgmr.msrb.gmra.mxu3 %vm124_vm0, %v3027_v9  ;;  %2282 = vtanh.f32 %v1276_v12 }
 0x37b   :  { %2132 = vmatmul.msk.f32.vlgmr.msra.gmra.mxu0 %vm124_vm0, %v3027_v9  ;;  %1655 = vmatpush.msrb.mxu3 %v2914_v58 }
 0x37c   :  { %1619 = vmatpush.msrb.mxu2 %v2911_v34  ;;  %1695 = vmatpush.msra.mxu0 %v2917_v35 }
 0x37d   :  { %1656 = vmatpush.msrb.mxu3 %v2925_v41 }
 0x37e   :  { %1620 = vmatpush.msrb.mxu2 %v2922_v39  ;;  %1696 = vmatpush.msra.mxu0 %v2928_v42 }
 0x37f   :  { %1657 = vmatpush.msrb.mxu3 %v2939_v31 }
 0x380   :  { %1621 = vmatpush.msrb.mxu2 %v2933_v45  ;;  %1697 = vmatpush.msra.mxu0 %v2945_v37  ;;  %v2283_v16 = vpop.eup %2282 }
 0x381   :  { %1658 = vmatpush.msrb.mxu3 %v2955_v40  ;;  %v1279_v17 = vmul.f32 %v2283_v16, %v1278_v2 }
 0x382   :  { %1622 = vmatpush.msrb.mxu2 %v2942_v61  ;;  %1698 = vmatpush.msra.mxu0 %v2958_v50 }
 0x383   :  { %v3051_v21 = vadd.f32 %v1280_v20, %v1279_v17 }
 0x385   :  { %2134 = vmatmul.msk.f32.vlgmr.msra.gmra.mxu1 %vm124_vm0, %v3051_v21  ;;  %2136 = vmatmul.msk.f32.vlgmr.msra.gmra.mxu2 %vm124_vm0, %v3051_v21 }
 0x386   :  { %2138 = vmatmul.msk.f32.vlgmr.msra.gmra.mxu3 %vm124_vm0, %v3051_v21  ;;  %1735 = vmatpush.msra.mxu1 %v2936_v62 }
 0x387   :  { %1773 = vmatpush.msra.mxu2 %v2961_v51  ;;  %1813 = vmatpush.msra.mxu3 %v2967_v54  ;;  %v2125_v51 = vld [vmem:[%s3247_s0 + $0xa] sm:$0x3] }
 0x388   :  { %1736 = vmatpush.msra.mxu1 %v2952_v27  ;;  %v2126_v54 = vld [vmem:[%s3248_s1 + $0xa] sm:$0x3] }
 0x389   :  { %1774 = vmatpush.msra.mxu2 %v2970_v56  ;;  %1814 = vmatpush.msra.mxu3 %v2976_v43 }
 0x38a   :  { %1737 = vmatpush.msra.mxu1 %v2964_v53 }
 0x38b   :  { %1775 = vmatpush.msra.mxu2 %v2979_v46  ;;  %1815 = vmatpush.msra.mxu3 %v2982_v59 }
 0x38c   :  { %1738 = vmatpush.msra.mxu1 %v2973_v57 }
 0x38d   :  { %1776 = vmatpush.msra.mxu2 %v2985_v15  ;;  %1816 = vmatpush.msra.mxu3 %v2988_v55  ;;  %v2133_v15 = vld [vmem:[%s3250_s3 + $0x4] sm:$0x3] }
 0x3f8   :  { %v1390_v2 = vpop.f32.mrf.mxu0 }
 0x3fd   :  { %v1310_v56 = vpop.f32.mrf.mxu2  ;;  %v1350_v43 = vpop.f32.mrf.mxu3 }
 0x3fe   :  { %v1313_v22 = vadd.f32 %v2125_v51, %v1310_v56  ;;  %v1353_v46 = vadd.f32 %v2126_v54, %v1350_v43  ;;  %v1391_v43 = vadd.f32 %v3008_v1, %v1390_v2 }
 0x400   :  { %v2129_v23 = vmul.f32 -1.442695, %v1313_v22  ;;  %v2131_v59 = vmul.f32 -1.442695, %v1353_v46 }
 0x402   :  { %2284 = vpow2.f32 %v2129_v23  ;;  %v1426_v55 = vpop.f32.mrf.mxu1 }
 0x403   :  { %2286 = vpow2.f32 %v2131_v59  ;;  %v1429_v24 = vadd.f32 %v2133_v15, %v1426_v55  ;;  %v2127_v15 = vld [vmem:[%s3249_s2 + $0xa] sm:$0x3] }
 0x405   :  { %v2135_v48 = vmul.f32 -1.442695, %v1429_v24 }
 0x407   :  { %2288 = vpow2.f32 %v2135_v48 }
 0x408   :  { %v2285_v28 = vpop.eup %2284  ;;  %v1466_v19 = vpop.f32.mrf.mxu2 }
 0x409   :  { %v2287_v30 = vpop.eup %2286  ;;  %v1317_v36 = vadd.f32 1.0, %v2285_v28  ;;  %v1469_v60 = vadd.f32 %v1466_v19, %v1403_v44  ;;  %v1506_v44 = vpop.f32.mrf.mxu3 }
 0x40a   :  { %v1357_v14 = vadd.f32 1.0, %v2287_v30 }
 0x40b   :  { %2290 = vrcp.f32 %v1317_v36  ;;  %v2137_v3 = vmul.f32 -1.442695, %v1469_v60  ;;  %v1329_v10 = vand.u32 2147483648, %v1317_v36  ;;  %v1327_v32 = vand.u32 2147483647, %v1317_v36 }
 0x40c   :  { %2292 = vrcp.f32 %v1357_v14  ;;  %vm1323_vm6 = vweird.f32 %v1317_v36  ;;  %vm1363_vm10 = vweird.f32 %v1357_v14  ;;  %v1369_v24 = vand.u32 2147483648, %v1357_v14 }
 0x40d   :  { %v2289_v0 = vpop.eup %2288  ;;  %2294 = vpow2.f32 %v2137_v3  ;;  %v1330_v54 = vor.u32 1.1754944e-38, %v1329_v10  ;;  %vm1328_vm8 = vcmp.eq.f32.partialorder %v1327_v32, 8.507059e+37  ;;  %v1367_v28 = vand.u32 2147483647, %v1357_v14 }
 0x40e   :  { %v1433_v4 = vadd.f32 1.0, %v2289_v0 }
 0x40f   :  { %vm1368_vm15 = vcmp.eq.f32.partialorder %v1367_v28, 8.507059e+37 }
 0x410   :  { %2296 = vrcp.f32 %v1433_v4  ;;  %v1445_v48 = vand.u32 2147483648, %v1433_v4  ;;  %vm1439_vm13 = vweird.f32 %v1433_v4 }
 0x411   :  { %v2291_v8 = vpop.eup %2290 }
 0x412   :  { %v2293_v25 = vpop.eup %2292  ;;  %v1319_v6 = vmul.f32 %v2291_v8, %v1317_v36  ;;  %vm1324_vm5 = vweird.f32 %v2291_v8  ;;  %v1443_v36 = vand.u32 2147483647, %v1433_v4 }
 0x413   :  { %v1359_v11 = vmul.f32 %v2293_v25, %v1357_v14  ;;  %v2295_v18 = vpop.eup %2294  ;;  %vm1325_vm7 = vmor %vm1323_vm6, %vm1324_vm5  ;;  %vm1364_vm9 = vweird.f32 %v2293_v25  ;;  %v1507_v14 = vadd.f32 %v3020_v26, %v1506_v44 }
 0x414   :  { %v1320_v7 = vsub.f32 1.0, %v1319_v6  ;;  %v1473_v51 = vadd.f32 1.0, %v2295_v18  ;;  %vm3084_vm12 = vmor %vm1363_vm10, %vm1364_vm9  ;;  %v1370_v6 = vor.u32 1.1754944e-38, %v1369_v24  ;;  %vm1444_vm1 = vcmp.eq.f32.partialorder %v1443_v36, 8.507059e+37 }
 0x415   :  { %v1360_v12 = vsub.f32 1.0, %v1359_v11  ;;  %v1446_v11 = vor.u32 1.1754944e-38, %v1445_v48 }
 0x416   :  { %v1321_v13 = vmul.f32 %v2291_v8, %v1320_v7  ;;  %v2297_v17 = vpop.eup %2296  ;;  %2298 = vrcp.f32 %v1473_v51  ;;  %vm1479_vm3 = vweird.f32 %v1473_v51 }
 0x417   :  { %v1361_v16 = vmul.f32 %v2293_v25, %v1360_v12  ;;  %v1435_v56 = vmul.f32 %v2297_v17, %v1433_v4  ;;  %vm1440_vm11 = vweird.f32 %v2297_v17  ;;  %v1405_v12 = vld [vmem:[#allocation5 + $0x4] sm:$0x3]  ;;  %v1483_v4 = vand.u32 2147483647, %v1473_v51 }
 0x418   :  { %v1322_v20 = vadd.f32 %v2291_v8, %v1321_v13  ;;  %vm1441_vm14 = vmor %vm1439_vm13, %vm1440_vm11 }
 0x419   :  { %v1362_v23 = vadd.f32 %v2293_v25, %v1361_v16  ;;  %v1436_v59 = vsub.f32 1.0, %v1435_v56  ;;  %v1485_v16 = vand.u32 2147483648, %v1473_v51  ;;  %vm1484_vm5 = vcmp.eq.f32.partialorder %v1483_v4, 8.507059e+37 }
 0x41a   :  { %v1326_v22 = vsel %vm1325_vm7, %v2291_v8, %v1322_v20 }
 0x41b   :  { %v1331_v46 = vsel %vm1328_vm8, %v1330_v54, %v1326_v22  ;;  %v1437_v30 = vmul.f32 %v2297_v17, %v1436_v59  ;;  %v1366_v3 = vsel %vm3084_vm12, %v2293_v25, %v1362_v23 }
 0x41c   :  { %v1393_v55 = vmul.f32 %v1391_v43, %v1331_v46  ;;  %v2299_v8 = vpop.eup %2298  ;;  %v1371_v32 = vsel %vm1368_vm15, %v1370_v6, %v1366_v3 }
 0x41d   :  { %v1438_v0 = vadd.f32 %v2297_v17, %v1437_v30  ;;  %v1475_v7 = vmul.f32 %v2299_v8, %v1473_v51  ;;  %vm1480_vm2 = vweird.f32 %v2299_v8  ;;  %v1396_v54 = vsub.f32 1.0, %v1371_v32  ;;  %v2147_v30 = vld [vmem:[%s3250_s3 + $0x2] sm:$0x3] }
 0x41e   :  { %v1394_v60 = vadd.f32 %v2127_v15, %v1393_v55  ;;  %v1398_v46 = vmul.f32 %v1371_v32, %v3027_v9  ;;  %vm1481_vm4 = vmor %vm1479_vm3, %vm1480_vm2 }
 0x41f   :  { %v1442_v10 = vsel %vm1441_vm14, %v2297_v17, %v1438_v0  ;;  %v1476_v18 = vsub.f32 1.0, %v1475_v7  ;;  %v1486_v17 = vor.u32 1.1754944e-38, %v1485_v16 }
 0x420   :  { %2300 = vtanh.f32 %v1394_v60  ;;  %v1447_v13 = vsel %vm1444_vm1, %v1446_v11, %v1442_v10 }
 0x421   :  { %v1509_v2 = vmul.f32 %v1507_v14, %v1447_v13  ;;  %v1477_v20 = vmul.f32 %v2299_v8, %v1476_v18 }
 0x423   :  { %v1510_v25 = vadd.f32 %v1509_v2, %v1405_v12  ;;  %v1478_v43 = vadd.f32 %v2299_v8, %v1477_v20 }
 0x425   :  { %2302 = vtanh.f32 %v1510_v25  ;;  %v1482_v23 = vsel %vm1481_vm4, %v2299_v8, %v1478_v43 }
 0x426   :  { %v2301_v56 = vpop.eup %2300  ;;  %v1487_v15 = vsel %vm1484_vm5, %v1486_v17, %v1482_v23 }
 0x427   :  { %v1397_v22 = vmul.f32 %v2301_v56, %v1396_v54  ;;  %v1512_v55 = vsub.f32 1.0, %v1487_v15  ;;  %v1514_v48 = vmul.f32 %v1487_v15, %v3051_v21 }
 0x429   :  { %v3092_v59 = vadd.f32 %v1398_v46, %v1397_v22  ;;  %v2141_v22 = vld [vmem:[%s3249_s2 + $0xc] sm:$0x3] }
 0x42b   :  { %2142 = vmatmul.msk.f32.vlgmr.msrb.gmra.mxu0 %vm124_vm0, %v3092_v59  ;;  %2144 = vmatmul.msk.f32.vlgmr.msrb.gmra.mxu1 %vm124_vm0, %v3092_v59  ;;  %v2303_v51 = vpop.eup %2302 }
 0x42c   :  { %2146 = vmatmul.msk.f32.vlgmr.msrb.gmra.mxu2 %vm124_vm0, %v3092_v59  ;;  %1853 = vmatpush.msrb.mxu0 %v2911_v34  ;;  %v1513_v24 = vmul.f32 %v2303_v51, %v1512_v55  ;;  %v2139_v34 = vld [vmem:[%s3247_s0 + $0xc] sm:$0x3] }
 0x42d   :  { %1886 = vmatpush.msrb.mxu1 %v2914_v58  ;;  %1926 = vmatpush.msrb.mxu2 %v2917_v35  ;;  %v2140_v58 = vld [vmem:[%s3248_s1 + $0xc] sm:$0x3] }
 0x42e   :  { %1854 = vmatpush.msrb.mxu0 %v2922_v39  ;;  %v3107_v28 = vadd.f32 %v1514_v48, %v1513_v24 }
 0x42f   :  { %1887 = vmatpush.msrb.mxu1 %v2925_v41  ;;  %1927 = vmatpush.msrb.mxu2 %v2928_v42 }
 0x430   :  { %1855 = vmatpush.msrb.mxu0 %v2933_v45  ;;  %2148 = vmatmul.msk.f32.vlgmr.msrb.gmra.mxu3 %vm124_vm0, %v3107_v28 }
 0x431   :  { %1888 = vmatpush.msrb.mxu1 %v2939_v31  ;;  %1928 = vmatpush.msrb.mxu2 %v2945_v37  ;;  %v1637_v31 = vld [vmem:[#allocation2 + $0x2] sm:$0x3] }
 0x432   :  { %1856 = vmatpush.msrb.mxu0 %v2942_v61  ;;  %1966 = vmatpush.msrb.mxu3 %v2936_v62 }
 0x433   :  { %2150 = vmatmul.msk.f32.vlgmr.msra.gmra.mxu0 %vm124_vm0, %v3107_v28  ;;  %2152 = vmatmul.msk.f32.vlgmr.msra.gmra.mxu1 %vm124_vm0, %v3107_v28 }
 0x434   :  { %1889 = vmatpush.msrb.mxu1 %v2955_v40  ;;  %1929 = vmatpush.msrb.mxu2 %v2958_v50 }
 0x435   :  { %1967 = vmatpush.msrb.mxu3 %v2952_v27 }
 0x437   :  { %1968 = vmatpush.msrb.mxu3 %v2964_v53 }
 0x439   :  { %1969 = vmatpush.msrb.mxu3 %v2973_v57 }
 0x4a8   :  { %v1544_v35 = vpop.f32.mrf.mxu0  ;;  %v1584_v39 = vpop.f32.mrf.mxu1 }
 0x4a9   :  { %v1547_v41 = vadd.f32 %v2139_v34, %v1544_v35  ;;  %v1587_v42 = vadd.f32 %v2140_v58, %v1584_v39 }
 0x4ab   :  { %v2143_v45 = vmul.f32 -1.442695, %v1547_v41  ;;  %v2145_v62 = vmul.f32 -1.442695, %v1587_v42 }
 0x4ad   :  { %2304 = vpow2.f32 %v2143_v45 }
 0x4ae   :  { %2306 = vpow2.f32 %v2145_v62 }
 0x4af   :  { %v1624_v2 = vpop.f32.mrf.mxu2 }
 0x4b0   :  { %v1700_v61 = vpop.f32.mrf.mxu0  ;;  %v1625_v54 = vadd.f32 %v3008_v1, %v1624_v2 }
 0x4b1   :  { %v1703_v37 = vadd.f32 %v1700_v61, %v1637_v31 }
 0x4b3   :  { %v2305_v27 = vpop.eup %2304  ;;  %v2151_v40 = vmul.f32 -1.442695, %v1703_v37  ;;  %v1660_v36 = vpop.f32.mrf.mxu3 }
 0x4b4   :  { %v2307_v50 = vpop.eup %2306  ;;  %v1551_v53 = vadd.f32 1.0, %v2305_v27  ;;  %v1663_v44 = vadd.f32 %v2147_v30, %v1660_v36  ;;  %v1740_v27 = vpop.f32.mrf.mxu1 }
 0x4b5   :  { %v1591_v57 = vadd.f32 1.0, %v2307_v50  ;;  %2308 = vpow2.f32 %v2151_v40  ;;  %v1741_v36 = vadd.f32 %v3020_v26, %v1740_v27 }
 0x4b6   :  { %2310 = vrcp.f32 %v1551_v53  ;;  %v2149_v19 = vmul.f32 -1.442695, %v1663_v44  ;;  %v1563_v10 = vand.u32 2147483648, %v1551_v53  ;;  %v1561_v13 = vand.u32 2147483647, %v1551_v53 }
 0x4b7   :  { %2312 = vrcp.f32 %v1591_v57  ;;  %vm1557_vm7 = vweird.f32 %v1551_v53  ;;  %v1603_v17 = vand.u32 2147483648, %v1591_v57  ;;  %vm1597_vm11 = vweird.f32 %v1591_v57 }
 0x4b8   :  { %2314 = vpow2.f32 %v2149_v19  ;;  %v1564_v20 = vor.u32 1.1754944e-38, %v1563_v10  ;;  %vm1562_vm9 = vcmp.eq.f32.partialorder %v1561_v13, 8.507059e+37  ;;  %v1601_v15 = vand.u32 2147483647, %v1591_v57 }
 0x4b9   :  { %v1604_v34 = vor.u32 1.1754944e-38, %v1603_v17 }
 0x4ba   :  { %vm1602_vm13 = vcmp.eq.f32.partialorder %v1601_v15, 8.507059e+37 }
 0x4bb   :  { %v2309_v60 = vpop.eup %2308 }
 0x4bc   :  { %v2311_v0 = vpop.eup %2310  ;;  %v3134_v3 = vadd.f32 1.0, %v2309_v60  ;;  %v1639_v60 = vld [vmem:[#allocation5 + $0x2] sm:$0x3] }
 0x4bd   :  { %v2313_v8 = vpop.eup %2312  ;;  %v1553_v6 = vmul.f32 %v2311_v0, %v1551_v53  ;;  %vm1558_vm6 = vweird.f32 %v2311_v0 }
 0x4be   :  { %v1593_v11 = vmul.f32 %v2313_v8, %v1591_v57  ;;  %2316 = vrcp.f32 %v3134_v3  ;;  %v2315_v32 = vpop.eup %2314  ;;  %vm1559_vm8 = vmor %vm1557_vm7, %vm1558_vm6  ;;  %vm1598_vm10 = vweird.f32 %v2313_v8  ;;  %vm1713_vm4 = vweird.f32 %v3134_v3 }
 0x4bf   :  { %v1554_v14 = vsub.f32 1.0, %v1553_v6  ;;  %v1667_v16 = vadd.f32 1.0, %v2315_v32  ;;  %vm1599_vm12 = vmor %vm1597_vm11, %vm1598_vm10 }
 0x4c0   :  { %v1594_v7 = vsub.f32 1.0, %v1593_v11  ;;  %v1717_v11 = vand.u32 2147483647, %v3134_v3 }
 0x4c1   :  { %v1555_v12 = vmul.f32 %v2311_v0, %v1554_v14  ;;  %2318 = vrcp.f32 %v1667_v16  ;;  %v1679_v42 = vand.u32 2147483648, %v1667_v16  ;;  %v1677_v31 = vand.u32 2147483647, %v1667_v16 }
 0x4c2   :  { %v1595_v18 = vmul.f32 %v2313_v8, %v1594_v7  ;;  %vm1673_vm15 = vweird.f32 %v1667_v16  ;;  %vm1718_vm6 = vcmp.eq.f32.partialorder %v1717_v11, 8.507059e+37 }
 0x4c3   :  { %v1556_v4 = vadd.f32 %v2311_v0, %v1555_v12  ;;  %v1680_v57 = vor.u32 1.1754944e-38, %v1679_v42  ;;  %vm1678_vm2 = vcmp.eq.f32.partialorder %v1677_v31, 8.507059e+37  ;;  %v2169_v42 = vld [vmem:[%s3255_s8 + $0x38] sm:$0xff] }
 0x4c4   :  { %v2317_v56 = vpop.eup %2316  ;;  %v1596_v43 = vadd.f32 %v2313_v8, %v1595_v18  ;;  %2007 = vmatpush.msra.mxu0 %v2169_v42 }
 0x4c5   :  { %v1560_v25 = vsel %vm1559_vm8, %v2311_v0, %v1556_v4  ;;  %v1709_v51 = vmul.f32 %v2317_v56, %v3134_v3  ;;  %vm1714_vm3 = vweird.f32 %v2317_v56 }
 0x4c6   :  { %v1565_v46 = vsel %vm1562_vm9, %v1564_v20, %v1560_v25  ;;  %v1600_v24 = vsel %vm1599_vm12, %v2313_v8, %v1596_v43  ;;  %v1719_v8 = vand.u32 2147483648, %v3134_v3  ;;  %vm1715_vm5 = vmor %vm1713_vm4, %vm1714_vm3  ;;  %v2153_v3 = vld [vmem:[%s3247_s0 + $0xe] sm:$0x3] }
 0x4c7   :  { %v1627_v23 = vmul.f32 %v1625_v54, %v1565_v46  ;;  %v2319_v48 = vpop.eup %2318  ;;  %v1605_v35 = vsel %vm1602_vm13, %v1604_v34, %v1600_v24  ;;  %v1710_v39 = vsub.f32 1.0, %v1709_v51  ;;  %v1868_v46 = vld [vmem:[%s3250_s3] sm:$0x3] }
 0x4c8   :  { %v1669_v58 = vmul.f32 %v2319_v48, %v1667_v16  ;;  %v1630_v45 = vsub.f32 1.0, %v1605_v35  ;;  %vm1674_vm14 = vweird.f32 %v2319_v48  ;;  %v1632_v53 = vmul.f32 %v1605_v35, %v3092_v59  ;;  %v2154_v16 = vld [vmem:[%s3248_s1 + $0xe] sm:$0x3]  ;;  %v1869_v34 = vld [vmem:[#allocation2] sm:$0x3] }
 0x4c9   :  { %v1628_v55 = vadd.f32 %v2141_v22, %v1627_v23  ;;  %v1711_v37 = vmul.f32 %v2317_v56, %v1710_v39  ;;  %vm1675_vm1 = vmor %vm1673_vm15, %vm1674_vm14  ;;  %v1720_v10 = vor.u32 1.1754944e-38, %v1719_v8 }
 0x4ca   :  { %v1670_v41 = vsub.f32 1.0, %v1669_v58 }
 0x4cb   :  { %2320 = vtanh.f32 %v1628_v55  ;;  %v1712_v19 = vadd.f32 %v2317_v56, %v1711_v37  ;;  %v1985_v37 = vld [vmem:[%s3255_s8 + $0x10] sm:$0xff] }
 0x4cc   :  { %v1671_v62 = vmul.f32 %v2319_v48, %v1670_v41 }
 0x4cd   :  { %v1716_v7 = vsel %vm1715_vm5, %v2317_v56, %v1712_v19 }
 0x4ce   :  { %v1672_v50 = vadd.f32 %v2319_v48, %v1671_v62  ;;  %v1721_v12 = vsel %vm1718_vm6, %v1720_v10, %v1716_v7 }
 0x4cf   :  { %v1746_v13 = vsub.f32 1.0, %v1721_v12  ;;  %v1748_v2 = vmul.f32 %v1721_v12, %v3107_v28 }
 0x4d0   :  { %v1676_v30 = vsel %vm1675_vm1, %v2319_v48, %v1672_v50  ;;  %v2167_v50 = vld [vmem:[%s3255_s8 + $0x28] sm:$0xff] }
 0x4d1   :  { %v2321_v61 = vpop.eup %2320  ;;  %v1681_v0 = vsel %vm1678_vm2, %v1680_v57, %v1676_v30 }
 0x4d2   :  { %v1631_v40 = vmul.f32 %v2321_v61, %v1630_v45  ;;  %v1743_v6 = vmul.f32 %v1741_v36, %v1681_v0  ;;  %v1986_v45 = vld [vmem:[%s3255_s8 + $0x18] sm:$0xff]  ;;  %v2168_v61 = vld [vmem:[%s3255_s8 + $0x30] sm:$0xff]  ;;  %v1983_v0 = vld [vmem:[%s3255_s8] sm:$0xff] }
 0x4d3   :  { %2030 = vmatpush.msra.mxu1 %v1986_v45  ;;  %2008 = vmatpush.msra.mxu0 %v2168_v61 }
 0x4d4   :  { %v3144_v44 = vadd.f32 %v1632_v53, %v1631_v40  ;;  %v1744_v14 = vadd.f32 %v1743_v6, %v1639_v60  ;;  %v1984_v53 = vld [vmem:[%s3255_s8 + $0x8] sm:$0xff]  ;;  %v2166_v60 = vld [vmem:[%s3255_s8 + $0x20] sm:$0xff] }
 0x4d5   :  { %2031 = vmatpush.msra.mxu1 %v1985_v37  ;;  %2009 = vmatpush.msra.mxu0 %v2167_v50 }
 0x4d6   :  { %2156 = vmatmul.msk.f32.vlgmr.msra.gmra.mxu2 %vm124_vm0, %v3144_v44  ;;  %2158 = vmatmul.msk.f32.vlgmr.msra.gmra.mxu3 %vm124_vm0, %v3144_v44  ;;  %2322 = vtanh.f32 %v1744_v14 }
 0x4d7   :  { %2160 = vmatmul.msk.f32.vlgmr.msrb.gmra.mxu0 %vm124_vm0, %v3144_v44  ;;  %2032 = vmatpush.msra.mxu1 %v1984_v53 }
 0x4d8   :  { %2010 = vmatpush.msra.mxu0 %v2166_v60 }
 0x4d9   :  { %2033 = vmatpush.msra.mxu1 %v1983_v0 }
 0x4dc   :  { %v2323_v32 = vpop.eup %2322 }
 0x4dd   :  { %v1747_v18 = vmul.f32 %v2323_v32, %v1746_v13 }
 0x4df   :  { %v3156_v4 = vadd.f32 %v1748_v2, %v1747_v18  ;;  %v2155_v2 = vld [vmem:[%s3249_s2 + $0xe] sm:$0x3] }
 0x4e1   :  { %2161 = vmatmul.msk.f32.vlgmr.msrb.gmra.mxu1 %vm124_vm0, %v3156_v4  ;;  %2163 = vmatmul.msk.f32.vlgmr.msrb.gmra.mxu2 %vm124_vm0, %v3156_v4 }
 0x4e2   :  { %2165 = vmatmul.msk.f32.vlgmr.msrb.gmra.mxu3 %vm124_vm0, %v3156_v4 }
 0x554   :  { %v1858_v14 = vpop.f32.mrf.mxu0 }
 0x555   :  { %v1859_v32 = vadd.f32 %v3008_v1, %v1858_v14 }
 0x559   :  { %v1778_v20 = vpop.f32.mrf.mxu2  ;;  %v1818_v25 = vpop.f32.mrf.mxu3 }
 0x55a   :  { %v1781_v54 = vadd.f32 %v2153_v3, %v1778_v20  ;;  %v1821_v56 = vadd.f32 %v2154_v16, %v1818_v25  ;;  %v580_v20 = vmax.f32 %v2686_v29, %v2770_v47 }
 0x55c   :  { %v2157_v43 = vmul.f32 -1.442695, %v1781_v54  ;;  %v2159_v22 = vmul.f32 -1.442695, %v1821_v56 }
 0x55e   :  { %2324 = vpow2.f32 %v2157_v43  ;;  %v1891_v17 = vpop.f32.mrf.mxu1 }
 0x55f   :  { %2326 = vpow2.f32 %v2159_v22  ;;  %v1894_v23 = vadd.f32 %v1891_v17, %v1868_v46  ;;  %v814_v22 = vmax.f32 %v580_v20, %v2839_v63 }
 0x561   :  { %v2162_v24 = vmul.f32 -1.442695, %v1894_v23 }
 0x564   :  { %v2325_v15 = vpop.eup %2324  ;;  %v1931_v58 = vpop.f32.mrf.mxu2 }
 0x565   :  { %v2327_v55 = vpop.eup %2326  ;;  %v1785_v51 = vadd.f32 1.0, %v2325_v15  ;;  %v1934_v35 = vadd.f32 %v1931_v58, %v1869_v34  ;;  %v1048_v15 = vmax.f32 %v814_v22, %v2902_v52 }
 0x566   :  { %v3173_v48 = vadd.f32 1.0, %v2327_v55 }
 0x567   :  { %2328 = vrcp.f32 %v1785_v51  ;;  %v2164_v39 = vmul.f32 -1.442695, %v1934_v35  ;;  %v1797_v36 = vand.u32 2147483648, %v1785_v51  ;;  %v1795_v6 = vand.u32 2147483647, %v1785_v51 }
 0x568   :  { %2330 = vrcp.f32 %v3173_v48  ;;  %vm1791_vm8 = vweird.f32 %v1785_v51  ;;  %v1837_v1 = vand.u32 2147483648, %v3173_v48  ;;  %vm1831_vm12 = vweird.f32 %v3173_v48 }
 0x569   :  { %2332 = vpow2.f32 %v2162_v24  ;;  %v1798_v13 = vor.u32 1.1754944e-38, %v1797_v36  ;;  %vm1796_vm10 = vcmp.eq.f32.partialorder %v1795_v6, 8.507059e+37  ;;  %v1835_v56 = vand.u32 2147483647, %v3173_v48 }
 0x56a   :  { %2334 = vpow2.f32 %v2164_v39  ;;  %v1838_v29 = vor.u32 1.1754944e-38, %v1837_v1  ;;  %v1282_v39 = vmax.f32 %v1048_v15, %v3027_v9 }
 0x56b   :  { %vm1836_vm14 = vcmp.eq.f32.partialorder %v1835_v56, 8.507059e+37 }
 0x56c   :  { %v1516_v9 = vmax.f32 %v1282_v39, %v3092_v59 }
 0x56d   :  { %v2329_v41 = vpop.eup %2328 }
 0x56e   :  { %v3182_v62 = vpop.eup %2330  ;;  %v1787_v31 = vmul.f32 %v2329_v41, %v1785_v51  ;;  %vm1792_vm7 = vweird.f32 %v2329_v41 }
 0x56f   :  { %v2333_v27 = vpop.eup %2332  ;;  %v1827_v40 = vmul.f32 %v3182_v62, %v3173_v48  ;;  %vm1793_vm9 = vmor %vm1791_vm8, %vm1792_vm7  ;;  %vm1832_vm11 = vweird.f32 %v3182_v62  ;;  %v1971_v48 = vpop.f32.mrf.mxu3  ;;  %vm2043_vm8 = vcmask 9216  }
 0x570   :  { %v1788_v57 = vsub.f32 1.0, %v1787_v31  ;;  %v1898_v30 = vadd.f32 1.0, %v2333_v27  ;;  %v2335_v11 = vpop.eup %2334  ;;  %vm1833_vm13 = vmor %vm1831_vm12, %vm1832_vm11  ;;  %v1972_v42 = vadd.f32 %v3020_v26, %v1971_v48  ;;  %v1870_v27 = vld [vmem:[#allocation5] sm:$0x3]  ;;  %v1750_v26 = vmax.f32 %v1516_v9, %v3144_v44 }
 0x571   :  { %v1828_v19 = vsub.f32 1.0, %v1827_v40  ;;  %v3205_v12 = vadd.f32 1.0, %v2335_v11 }
 0x572   :  { %v1789_v8 = vmul.f32 %v2329_v41, %v1788_v57  ;;  %2336 = vrcp.f32 %v1898_v30  ;;  %v1908_v47 = vand.u32 2147483647, %v1898_v30  ;;  %v1910_v51 = vand.u32 2147483648, %v1898_v30 }
 0x573   :  { %v1829_v7 = vmul.f32 %v3182_v62, %v1828_v19  ;;  %2338 = vrcp.f32 %v3205_v12  ;;  %vm1904_vm1 = vweird.f32 %v1898_v30  ;;  %vm1944_vm5 = vweird.f32 %v3205_v12 }
 0x574   :  { %v1790_v10 = vadd.f32 %v2329_v41, %v1789_v8  ;;  %vm1909_vm3 = vcmp.eq.f32.partialorder %v1908_v47, 8.507059e+37  ;;  %v1911_v52 = vor.u32 1.1754944e-38, %v1910_v51  ;;  %v1948_v37 = vand.u32 2147483647, %v3205_v12 }
 0x575   :  { %v1830_v16 = vadd.f32 %v3182_v62, %v1829_v7  ;;  %v581_v8 = vmax.f32 %v2700_v33, %v2780_v49 }
 0x576   :  { %v1794_v18 = vsel %vm1793_vm9, %v2329_v41, %v1790_v10  ;;  %v1950_v41 = vand.u32 2147483648, %v3205_v12  ;;  %vm1949_vm7 = vcmp.eq.f32.partialorder %v1948_v37, 8.507059e+37 }
 0x577   :  { %v1799_v3 = vsel %vm1796_vm10, %v1798_v13, %v1794_v18  ;;  %v1834_v17 = vsel %vm1833_vm13, %v3182_v62, %v1830_v16  ;;  %v815_v59 = vmax.f32 %v581_v8, %v2861_v5 }
 0x578   :  { %v2337_v25 = vpop.eup %2336  ;;  %v1861_v54 = vmul.f32 %v1859_v32, %v1799_v3  ;;  %v1839_v58 = vsel %vm1836_vm14, %v1838_v29, %v1834_v17  ;;  %v1951_v36 = vor.u32 1.1754944e-38, %v1950_v41 }
 0x579   :  { %v1900_v43 = vmul.f32 %v2337_v25, %v1898_v30  ;;  %v2339_v55 = vpop.eup %2338  ;;  %vm1905_vm15 = vweird.f32 %v2337_v25  ;;  %v1864_v31 = vsub.f32 1.0, %v1839_v58  ;;  %v1866_v30 = vmul.f32 %v1839_v58, %v3144_v44 }
 0x57a   :  { %v1862_v46 = vadd.f32 %v2155_v2, %v1861_v54  ;;  %v1940_v24 = vmul.f32 %v2339_v55, %v3205_v12  ;;  %vm1906_vm2 = vmor %vm1904_vm1, %vm1905_vm15  ;;  %vm1945_vm4 = vweird.f32 %v2339_v55  ;;  %v1049_v7 = vmax.f32 %v815_v59, %v2920_v38  ;;  %v2183_v2 = vld [vmem:[%s3256_s9] ss:$0 sm:$0xff] }
 0x57b   :  { %v1901_v23 = vsub.f32 1.0, %v1900_v43  ;;  %vm1946_vm6 = vmor %vm1944_vm5, %vm1945_vm4 }
 0x57c   :  { %2340 = vtanh.f32 %v1862_v46  ;;  %v1941_v63 = vsub.f32 1.0, %v1940_v24  ;;  %v1283_v44 = vmax.f32 %v1049_v7, %v3051_v21 }
 0x57d   :  { %v1902_v34 = vmul.f32 %v2337_v25, %v1901_v23 }
 0x57e   :  { %v1942_v45 = vmul.f32 %v2339_v55, %v1941_v63  ;;  %v1517_v13 = vmax.f32 %v1283_v44, %v3107_v28 }
 0x57f   :  { %v1903_v35 = vadd.f32 %v2337_v25, %v1902_v34 }
 0x580   :  { %v1943_v50 = vadd.f32 %v2339_v55, %v1942_v45  ;;  %v1751_v33 = vmax.f32 %v1517_v13, %v3156_v4 }
 0x581   :  { %v1907_v62 = vsel %vm1906_vm2, %v2337_v25, %v1903_v35 }
 0x582   :  { %v2341_v61 = vpop.eup %2340  ;;  %v1912_v40 = vsel %vm1909_vm3, %v1911_v52, %v1907_v62  ;;  %v1947_v19 = vsel %vm1946_vm6, %v2339_v55, %v1943_v50 }
 0x583   :  { %v1974_v53 = vmul.f32 %v1972_v42, %v1912_v40  ;;  %v1865_v57 = vmul.f32 %v2341_v61, %v1864_v31  ;;  %v1952_v6 = vsel %vm1949_vm7, %v1951_v36, %v1947_v19 }
 0x584   :  { %v1977_v14 = vsub.f32 1.0, %v1952_v6  ;;  %v1979_v32 = vmul.f32 %v1952_v6, %v3156_v4 }
 0x585   :  { %v1975_v60 = vadd.f32 %v1974_v53, %v1870_v27  ;;  %v1867_v0 = vadd.f32 %v1866_v30, %v1865_v57 }
 0x587   :  { %2342 = vtanh.f32 %v1975_v60  ;;  %v1981_v11 = vmax.f32 %v1750_v26, %v1867_v0 }
 0x589   :  { %2171 = vmatmul.msk.f32.vlgmr.msra.gmra.mxu1 %vm124_vm0, %v1981_v11 }
 0x58d   :  { %v2343_v10 = vpop.eup %2342 }
 0x58e   :  { %v1978_v12 = vmul.f32 %v2343_v10, %v1977_v14 }
 0x590   :  { %v1980_v49 = vadd.f32 %v1979_v32, %v1978_v12 }
 0x592   :  { %v1982_v18 = vmax.f32 %v1751_v33, %v1980_v49 }
 0x594   :  { %2170 = vmatmul.msk.f32.vlgmr.msra.gmra.mxu0 %vm124_vm0, %v1982_v18 }
 0x606   :  { %v2035_v5 = vpop.f32.mrf.mxu1 }
 0x611   :  { %v2012_v38 = vpop.f32.mrf.mxu0 }
 0x612   :  { %v2036_v21 = vadd.f32 %v2035_v5, %v2012_v38 }
 0x614   :  { %v2042_v28 = vadd.f32 %v2183_v2, %v2036_v21 }
 0x616   :  { %2044 = vst.msk [vmem:[#allocation8] sm:$0x3] %vm2043_vm8, %v2042_v28 }
 0x617   :  { %2055 = dma.vmem_to_hbm [thread:$0]  %s2051_s24, 32, %s2053_s27, [#allocation4]  }
 0x618   :  { %2470 = dma.done.wait [#allocation4], 32  }
 0x619   :  { %2471 = vsyncadd [#allocation4], 4294967264 }
 0x61a   :  { %2060 = vsyncpa [#allocation3], 1 }
 0x61b   :  { %2061 = vsyncpa [#allocation6], 1 }
 0x61c   :  { %2062 = vsyncpa [#allocation4], 1 }

</bundles_post_ra>
